<compile_context>
chip_gen: v5e
topology: v5e:2x2
jax: 0.10.0
libtpu: 0.0.40
codegen_flags: <defaults>
</compile_context>

<pallas_src>
import functools

import jax
import jax.numpy as jnp
from jax import lax
from jax.experimental import pallas as pl
from jax.experimental.pallas import tpu as pltpu

_LANE = 128


def _round_up(x, m):
    return (x + m - 1) // m * m


def _pick_row_tile(h, target=8):
    """Largest divisor of h that is <= target (row-slab height)."""
    t = min(h, target)
    while h % t:
        t -= 1
    return t


def _conv_stats_kernel(xpad_ref, w_ref, conv_ref, stats_ref, *,
                       TH, Wo, Cinp, Coutp, KH, KW, dilation):
    """Dilated conv for one (batch, row-slab) tile + partial BN statistics.

    xpad_ref : (Hp, Wp, Cinp)       zero-padded input for this batch element
                                    (resident across the row-slab grid axis)
    w_ref    : (KH*KW*Cinp, Coutp)  im2col-flattened conv weight (resident)
    conv_ref : (TH, Wo, Coutp)      f32 conv output slab
    stats_ref: (2, Coutp)           [sum ; sum-of-squares] over this slab
    """
    h = pl.program_id(1)
    row0 = pl.multiple_of(h * TH, TH)

    # im2col patch slab: slice the *ref* per tap (no whole-array materialized
    # copy), then issue a single fused MXU matmul.
    patches = []
    for kh in range(KH):
        r0 = row0 + kh * dilation
        for kw in range(KW):
            c0 = kw * dilation
            p = xpad_ref[pl.ds(r0, TH), pl.ds(c0, Wo), :]      # (TH, Wo, Cinp)
            patches.append(p.reshape(TH * Wo, Cinp))
    lhs = jnp.concatenate(patches, axis=-1)                    # (TH*Wo, KH*KW*Cinp)

    # Native-dtype operands, f32 accumulation on the MXU.
    acc = jnp.dot(lhs, w_ref[...], preferred_element_type=jnp.float32)

    conv_ref[...] = acc.reshape(TH, Wo, Coutp)

    # Partial BatchNorm statistics fused into the conv pass (avoids a second
    # full read of the conv output just to compute mean/var).
    s = jnp.sum(acc, axis=0, keepdims=True)                    # (1, Coutp)
    ss = jnp.sum(acc * acc, axis=0, keepdims=True)             # (1, Coutp)
    stats_ref[...] = jnp.concatenate([s, ss], axis=0)          # (2, Coutp)


def _bn_relu_kernel(conv_ref, scale_ref, shift_ref, out_ref):
    """Pre-folded BN affine + ReLU: y = relu(conv * scale + shift)."""
    y = conv_ref[...] * scale_ref[...] + shift_ref[...]
    out_ref[...] = jnp.maximum(y, 0.0).astype(out_ref.dtype)


def aspp_conv_forward(x_nchw, weight_oihw, gamma, beta, *, padding, dilation,
                      eps=1e-5):
    """Forward pass matching ASPPConv(inplanes, outplanes, k, padding, dilation)."""
    N, Cin, H, W = x_nchw.shape
    Cout, _, KH, KW = weight_oihw.shape

    # stride=1 output spatial size (matches nn.Conv2d)
    Ho = H + 2 * padding - dilation * (KH - 1)
    Wo = W + 2 * padding - dilation * (KW - 1)
    Hp, Wp = H + 2 * padding, W + 2 * padding

    # Pad channel dims to the 128-lane width -> lane-dense loads/stores.
    # (For realistic ASPP channel counts this is a no-op.)
    Cinp = _round_up(Cin, _LANE)
    Coutp = _round_up(Cout, _LANE)

    # NCHW -> NHWC; spatial zero-pad and channel pad fused into ONE jnp.pad.
    # TODO(synk): in a real pipeline keep NHWC end-to-end and drop these
    #             boundary transposes; they exist only to match PyTorch NCHW.
    x_nhwc = jnp.transpose(x_nchw, (0, 2, 3, 1))
    xpad = jnp.pad(x_nhwc, ((0, 0), (padding, padding), (padding, padding),
                            (0, Cinp - Cin)))

    # OIHW -> (KH, KW, Cin, Cout), channel-pad, flatten to the im2col weight.
    w = jnp.transpose(weight_oihw, (2, 3, 1, 0))
    w = jnp.pad(w, ((0, 0), (0, 0), (0, Cinp - Cin), (0, Coutp - Cout)))
    w2d = w.reshape(KH * KW * Cinp, Coutp).astype(x_nchw.dtype)

    TH = _pick_row_tile(Ho, target=8)
    Hg = Ho // TH

    # TODO(synk): for production ASPP feature maps whose padded image exceeds
    # VMEM (e.g. 65x65x2048 on v7x's 64 MiB), also tile the *input* H axis with
    # a dilation*(KH-1)-row halo instead of keeping the whole image resident.

    conv_kernel = functools.partial(
        _conv_stats_kernel, TH=TH, Wo=Wo, Cinp=Cinp, Coutp=Coutp,
        KH=KH, KW=KW, dilation=dilation)

    # ---- Pass 1: conv + partial stats, pipelined over (batch, row-slab) ----
    conv, stats = pl.pallas_call(
        conv_kernel,
        out_shape=(jax.ShapeDtypeStruct((N, Ho, Wo, Coutp), jnp.float32),
                   jax.ShapeDtypeStruct((N, Hg, 2, Coutp), jnp.float32)),
        grid=(N, Hg),
        in_specs=[
            # padded image of batch n: resident across the row-slab axis
            pl.BlockSpec((None, Hp, Wp, Cinp), lambda n, h: (n, 0, 0, 0)),
            # im2col weight: resident across the whole grid
            pl.BlockSpec((KH * KW * Cinp, Coutp), lambda n, h: (0, 0)),
        ],
        out_specs=(
            pl.BlockSpec((None, TH, Wo, Coutp), lambda n, h: (n, h, 0, 0)),
            pl.BlockSpec((None, None, 2, Coutp), lambda n, h: (n, h, 0, 0)),
        ),
        compiler_params=pltpu.CompilerParams(
            # both axes independent -> shardable across v7x's two TensorCores
            dimension_semantics=("parallel", "parallel"),
            vmem_limit_bytes=32 * 1024 * 1024),
    )(xpad, w2d)

    # ---- Tiny global-stat reduction + BN affine fold (XLA, a few KB) ----
    cnt = float(N * Ho * Wo)
    total = jnp.sum(stats, axis=(0, 1))                        # (2, Coutp)
    mean = total[0] / cnt
    # training-mode (biased) variance, eps inside rsqrt — matches nn.BatchNorm2d
    var = jnp.maximum(total[1] / cnt - mean * mean, 0.0)
    inv = lax.rsqrt(var + eps)
    gamma_p = jnp.pad(gamma.astype(jnp.float32), (0, Coutp - Cout))
    beta_p = jnp.pad(beta.astype(jnp.float32), (0, Coutp - Cout))
    scale = (gamma_p * inv).reshape(1, Coutp)
    shift = (beta_p - mean * gamma_p * inv).reshape(1, Coutp)

    # ---- Pass 2: BN apply + ReLU, streamed over the same grid ----
    out_nhwc = pl.pallas_call(
        _bn_relu_kernel,
        out_shape=jax.ShapeDtypeStruct((N, Ho, Wo, Coutp), x_nchw.dtype),
        grid=(N, Hg),
        in_specs=[
            pl.BlockSpec((None, TH, Wo, Coutp), lambda n, h: (n, h, 0, 0)),
            pl.BlockSpec((1, Coutp), lambda n, h: (0, 0)),
            pl.BlockSpec((1, Coutp), lambda n, h: (0, 0)),
        ],
        out_specs=pl.BlockSpec((None, TH, Wo, Coutp), lambda n, h: (n, h, 0, 0)),
        compiler_params=pltpu.CompilerParams(
            dimension_semantics=("parallel", "parallel")),
    )(conv, scale, shift)

    # Strip channel padding, back to NCHW to match the PyTorch module.
    return jnp.transpose(out_nhwc[..., :Cout], (0, 3, 1, 2))


def _reference(x_nchw, weight_oihw, gamma, beta, *, padding, dilation, eps=1e-5):
    conv = lax.conv_general_dilated(
        x_nchw.astype(jnp.float32), weight_oihw.astype(jnp.float32),
        window_strides=(1, 1),
        padding=((padding, padding), (padding, padding)),
        rhs_dilation=(dilation, dilation),
        dimension_numbers=("NCHW", "OIHW", "NCHW"))
    mean = conv.mean(axis=(0, 2, 3), keepdims=True)
    var = ((conv - mean) ** 2).mean(axis=(0, 2, 3), keepdims=True)
    bn = (conv - mean) * lax.rsqrt(var + eps) \
        * gamma.reshape(1, -1, 1, 1) + beta.reshape(1, -1, 1, 1)
    return jnp.maximum(bn, 0.0)


if __name__ == "__main__":
    # ASPPConv(inplanes=4, outplanes=8, kernel_size=3, padding=2, dilation=2)
    N, Cin, H, W = 2, 4, 16, 16
    Cout, K, padding, dilation = 8, 3, 2, 2

    key = jax.random.PRNGKey(0)
    kx, kw = jax.random.split(key)

    x = jax.random.normal(kx, (N, Cin, H, W), dtype=jnp.float32)
    # Conv2d weight (bias=False): shape (Cout, Cin, K, K)
    weight = 0.1 * jax.random.normal(kw, (Cout, Cin, K, K), dtype=jnp.float32)
    # BatchNorm2d default init: gamma=1, beta=0
    gamma = jnp.ones((Cout,), dtype=jnp.float32)
    beta = jnp.zeros((Cout,), dtype=jnp.float32)

    out = aspp_conv_forward(x, weight, gamma, beta,
                            padding=padding, dilation=dilation)
    out = jax.block_until_ready(out)

    ref = _reference(x, weight, gamma, beta, padding=padding, dilation=dilation)
    assert out.shape == ref.shape
    assert jnp.max(jnp.abs(out - ref)) < 2e-4

    print("KERNEL_OK")
</pallas_src>

<mosaic_0001>
module attributes {stable_mosaic.version = 11 : i64} {
  func.func @_conv_stats_kernel(%arg0: i32, %arg1: i32, %arg2: memref<1x20x20x128xf32, #tpu.memory_space<vmem>>, %arg3: memref<1152x128xf32, #tpu.memory_space<vmem>>, %arg4: memref<1x8x16x128xf32, #tpu.memory_space<vmem>>, %arg5: memref<1x1x2x128xf32, #tpu.memory_space<vmem>>) attributes {dimension_semantics = [#tpu.dimension_semantics<parallel>, #tpu.dimension_semantics<parallel>], iteration_bounds = array<i64: 2, 2>, scalar_prefetch = 0 : i64, scratch_operands = 0 : i64, tpu.core_type = #tpu.core_type<tc>, window_params = [{transform_indices = @transform_0, window_bounds = array<i64: 1, 20, 20, 128>}, {pipeline_mode = #tpu.pipeline_mode<synchronous>, transform_indices = @transform_1, window_bounds = array<i64: 1152, 128>}, {transform_indices = @transform_2, window_bounds = array<i64: 1, 8, 16, 128>}, {transform_indices = @transform_3, window_bounds = array<i64: 1, 1, 2, 128>}]} {
    %c8_i32 = arith.constant 8 : i32
    %0 = arith.muli %arg1, %c8_i32 : i32
    %1 = tpu.assume_multiple %0, 8 : i32
    %c0_i32 = arith.constant 0 : i32
    %2 = arith.addi %1, %c0_i32 : i32
    %c0 = arith.constant 0 : index
    %3 = arith.index_cast %2 : i32 to index
    %c0_0 = arith.constant 0 : index
    %c0_1 = arith.constant 0 : index
    %4 = vector.load %arg2[%c0, %3, %c0_0, %c0_1] : memref<1x20x20x128xf32, #tpu.memory_space<vmem>>, vector<1x8x16x128xf32>
    %5 = vector.shape_cast %4 : vector<1x8x16x128xf32> to vector<8x16x128xf32>
    %6 = vector.shape_cast %5 : vector<8x16x128xf32> to vector<128x128xf32>
    %c0_2 = arith.constant 0 : index
    %7 = arith.index_cast %2 : i32 to index
    %c2 = arith.constant 2 : index
    %c0_3 = arith.constant 0 : index
    %8 = vector.load %arg2[%c0_2, %7, %c2, %c0_3] : memref<1x20x20x128xf32, #tpu.memory_space<vmem>>, vector<1x8x16x128xf32>
    %9 = vector.shape_cast %8 : vector<1x8x16x128xf32> to vector<8x16x128xf32>
    %10 = vector.shape_cast %9 : vector<8x16x128xf32> to vector<128x128xf32>
    %c0_4 = arith.constant 0 : index
    %11 = arith.index_cast %2 : i32 to index
    %c4 = arith.constant 4 : index
    %c0_5 = arith.constant 0 : index
    %12 = vector.load %arg2[%c0_4, %11, %c4, %c0_5] : memref<1x20x20x128xf32, #tpu.memory_space<vmem>>, vector<1x8x16x128xf32>
    %13 = vector.shape_cast %12 : vector<1x8x16x128xf32> to vector<8x16x128xf32>
    %14 = vector.shape_cast %13 : vector<8x16x128xf32> to vector<128x128xf32>
    %c2_i32 = arith.constant 2 : i32
    %15 = arith.addi %1, %c2_i32 : i32
    %c0_6 = arith.constant 0 : index
    %16 = arith.index_cast %15 : i32 to index
    %c0_7 = arith.constant 0 : index
    %c0_8 = arith.constant 0 : index
    %17 = vector.load %arg2[%c0_6, %16, %c0_7, %c0_8] : memref<1x20x20x128xf32, #tpu.memory_space<vmem>>, vector<1x8x16x128xf32>
    %18 = vector.shape_cast %17 : vector<1x8x16x128xf32> to vector<8x16x128xf32>
    %19 = vector.shape_cast %18 : vector<8x16x128xf32> to vector<128x128xf32>
    %c0_9 = arith.constant 0 : index
    %20 = arith.index_cast %15 : i32 to index
    %c2_10 = arith.constant 2 : index
    %c0_11 = arith.constant 0 : index
    %21 = vector.load %arg2[%c0_9, %20, %c2_10, %c0_11] : memref<1x20x20x128xf32, #tpu.memory_space<vmem>>, vector<1x8x16x128xf32>
    %22 = vector.shape_cast %21 : vector<1x8x16x128xf32> to vector<8x16x128xf32>
    %23 = vector.shape_cast %22 : vector<8x16x128xf32> to vector<128x128xf32>
    %c0_12 = arith.constant 0 : index
    %24 = arith.index_cast %15 : i32 to index
    %c4_13 = arith.constant 4 : index
    %c0_14 = arith.constant 0 : index
    %25 = vector.load %arg2[%c0_12, %24, %c4_13, %c0_14] : memref<1x20x20x128xf32, #tpu.memory_space<vmem>>, vector<1x8x16x128xf32>
    %26 = vector.shape_cast %25 : vector<1x8x16x128xf32> to vector<8x16x128xf32>
    %27 = vector.shape_cast %26 : vector<8x16x128xf32> to vector<128x128xf32>
    %c4_i32 = arith.constant 4 : i32
    %28 = arith.addi %1, %c4_i32 : i32
    %c0_15 = arith.constant 0 : index
    %29 = arith.index_cast %28 : i32 to index
    %c0_16 = arith.constant 0 : index
    %c0_17 = arith.constant 0 : index
    %30 = vector.load %arg2[%c0_15, %29, %c0_16, %c0_17] : memref<1x20x20x128xf32, #tpu.memory_space<vmem>>, vector<1x8x16x128xf32>
    %31 = vector.shape_cast %30 : vector<1x8x16x128xf32> to vector<8x16x128xf32>
    %32 = vector.shape_cast %31 : vector<8x16x128xf32> to vector<128x128xf32>
    %c0_18 = arith.constant 0 : index
    %33 = arith.index_cast %28 : i32 to index
    %c2_19 = arith.constant 2 : index
    %c0_20 = arith.constant 0 : index
    %34 = vector.load %arg2[%c0_18, %33, %c2_19, %c0_20] : memref<1x20x20x128xf32, #tpu.memory_space<vmem>>, vector<1x8x16x128xf32>
    %35 = vector.shape_cast %34 : vector<1x8x16x128xf32> to vector<8x16x128xf32>
    %36 = vector.shape_cast %35 : vector<8x16x128xf32> to vector<128x128xf32>
    %c0_21 = arith.constant 0 : index
    %37 = arith.index_cast %28 : i32 to index
    %c4_22 = arith.constant 4 : index
    %c0_23 = arith.constant 0 : index
    %38 = vector.load %arg2[%c0_21, %37, %c4_22, %c0_23] : memref<1x20x20x128xf32, #tpu.memory_space<vmem>>, vector<1x8x16x128xf32>
    %39 = vector.shape_cast %38 : vector<1x8x16x128xf32> to vector<8x16x128xf32>
    %40 = vector.shape_cast %39 : vector<8x16x128xf32> to vector<128x128xf32>
    %41 = tpu.concatenate %6, %10, %14, %19, %23, %27, %32, %36, %40 in 1 : vector<128x128xf32>, vector<128x128xf32>, vector<128x128xf32>, vector<128x128xf32>, vector<128x128xf32>, vector<128x128xf32>, vector<128x128xf32>, vector<128x128xf32>, vector<128x128xf32> -> vector<128x1152xf32>
    %c0_24 = arith.constant 0 : index
    %c0_25 = arith.constant 0 : index
    %42 = vector.load %arg3[%c0_24, %c0_25] : memref<1152x128xf32, #tpu.memory_space<vmem>>, vector<1152x128xf32>
    %cst = arith.constant dense<0.000000e+00> : vector<128x128xf32>
    %43 = tpu.matmul %41, %42, %cst {dimension_numbers = #tpu.dot_dimension_numbers<[1], [0], [0], [1], [0, 0, 1, 1], [], []>} : vector<128x1152xf32>, vector<1152x128xf32>, vector<128x128xf32> -> vector<128x128xf32>
    %44 = vector.shape_cast %43 : vector<128x128xf32> to vector<8x16x128xf32>
    %c0_26 = arith.constant 0 : index
    %c0_27 = arith.constant 0 : index
    %c0_28 = arith.constant 0 : index
    %c0_29 = arith.constant 0 : index
    %45 = vector.load %arg4[%c0_26, %c0_27, %c0_28, %c0_29] : memref<1x8x16x128xf32, #tpu.memory_space<vmem>>, vector<1x8x16x128xf32>
    %46 = vector.shape_cast %45 : vector<1x8x16x128xf32> to vector<8x16x128xf32>
    %47 = vector.shape_cast %44 : vector<8x16x128xf32> to vector<1x8x16x128xf32>
    tpu.vector_store %arg4[%c0_26, %c0_27, %c0_28, %c0_29], %47 {strides = array<i32>} : memref<1x8x16x128xf32, #tpu.memory_space<vmem>>, vector<1x8x16x128xf32>,
    %cst_30 = arith.constant dense<0.000000e+00> : vector<128xf32>
    %48 = vector.multi_reduction <add>, %43, %cst_30 [0] : vector<128x128xf32> to vector<128xf32>
    %49 = vector.shape_cast %48 : vector<128xf32> to vector<1x128xf32>
    %50 = arith.mulf %43, %43 : vector<128x128xf32>
    %cst_31 = arith.constant dense<0.000000e+00> : vector<128xf32>
    %51 = vector.multi_reduction <add>, %50, %cst_31 [0] : vector<128x128xf32> to vector<128xf32>
    %52 = vector.shape_cast %51 : vector<128xf32> to vector<1x128xf32>
    %53 = tpu.concatenate %49, %52 in 0 : vector<1x128xf32>, vector<1x128xf32> -> vector<2x128xf32>
    %c0_32 = arith.constant 0 : index
    %c0_33 = arith.constant 0 : index
    %c0_34 = arith.constant 0 : index
    %c0_35 = arith.constant 0 : index
    %54 = vector.load %arg5[%c0_32, %c0_33, %c0_34, %c0_35] : memref<1x1x2x128xf32, #tpu.memory_space<vmem>>, vector<1x1x2x128xf32>
    %55 = vector.shape_cast %54 : vector<1x1x2x128xf32> to vector<2x128xf32>
    %56 = vector.shape_cast %53 : vector<2x128xf32> to vector<1x1x2x128xf32>
    tpu.vector_store %arg5[%c0_32, %c0_33, %c0_34, %c0_35], %56 {strides = array<i32>} : memref<1x1x2x128xf32, #tpu.memory_space<vmem>>, vector<1x1x2x128xf32>,
    return
  }
  func.func @transform_0(%arg0: i32, %arg1: i32) -> (i32, i32, i32, i32) {
    %c0_i32 = arith.constant 0 : i32
    %c0_i32_0 = arith.constant 0 : i32
    %c0_i32_1 = arith.constant 0 : i32
    %c0_i32_2 = arith.constant 0 : i32
    return %arg0, %c0_i32, %c0_i32_0, %c0_i32_1 : i32, i32, i32, i32
  }
  func.func @transform_1(%arg0: i32, %arg1: i32) -> (i32, i32) {
    %c0_i32 = arith.constant 0 : i32
    %c0_i32_0 = arith.constant 0 : i32
    %c0_i32_1 = arith.constant 0 : i32
    return %c0_i32, %c0_i32_0 : i32, i32
  }
  func.func @transform_2(%arg0: i32, %arg1: i32) -> (i32, i32, i32, i32) {
    %c0_i32 = arith.constant 0 : i32
    %c0_i32_0 = arith.constant 0 : i32
    %c0_i32_1 = arith.constant 0 : i32
    return %arg0, %arg1, %c0_i32, %c0_i32_0 : i32, i32, i32, i32
  }
  func.func @transform_3(%arg0: i32, %arg1: i32) -> (i32, i32, i32, i32) {
    %c0_i32 = arith.constant 0 : i32
    %c0_i32_0 = arith.constant 0 : i32
    %c0_i32_1 = arith.constant 0 : i32
    return %arg0, %arg1, %c0_i32, %c0_i32_0 : i32, i32, i32, i32
  }
}

</mosaic_0001>

<bundles_post_ra>
// kernel: tpu_custom_call.1
= control target key start
LH: loop header
LB: loop body
LE: loop exit
PB: predicated region body
PF: predicated region fallthrough
CT: control target
= control target key end

     0   :  { %9 = vsyncpa [#allocation3], 0  ;;  %s2678_s0 = inlined_call_operand.vmem [shape: f32[2,20,20,128], index: 0, kind: input, shape index: {}]   ;;  %s2679_s1 = inlined_call_operand.vmem [shape: f32[1152,128], index: 1, kind: input, shape index: {}]   ;;  %s2680_s2 = inlined_call_operand.hbm [shape: f32[2,16,16,128], index: 2, kind: output, shape index: {0}]   ;;  %s2681_s3 = inlined_call_operand.hbm [shape: f32[2,2,2,128], index: 3, kind: output, shape index: {1}]  }
   0x1   :  { %11 = vsyncpa [#allocation3 + $0x1], 0 }
   0x2   :  { %12 = vsyncpa [#allocation5], 0 }
   0x3   :  { %14 = vsyncpa [#allocation5 + $0x1], 0  ;;  %s1715_s12 = smov 0   ;;  %s1717_s13 = smov 0  }
   0x4   :  { %s1719_s14 = smov 0   ;;  %s1721_s15 = smov 0  }
   0x5   :  { %s1723_s16 = smov 0   ;;  %s1725_s17 = smov 0  }
   0x6   :  { %s1727_s18 = smov 0   ;;  %s1729_s19 = smov 0  }
   0x7 LB: > { %s1317_s20 = sadd.s32 4294967295, %s1691_s19   ;;  %s1318_s21 = sadd.s32 4294967294, %s1691_s19   ;;  %s1691_s19 = sphi %s1729_s19, %s20_s19   ;;  %s1687_s18 = sphi %s1727_s18, %s2690_s18   ;;  %s1683_s17 = sphi %s1725_s17, %s2689_s17   ;;  %s1679_s16 = sphi %s1723_s16, %s2688_s16   ;;  %s1675_s15 = sphi %s1721_s15, %s2687_s15   ;;  %s1671_s14 = sphi %s1719_s14, %s2686_s14   ;;  %s1667_s13 = sphi %s1717_s13, %s2685_s13   ;;  %s1663_s12 = sphi %s1715_s12, %s2684_s12  }
   0x8   : > { %s29_s22 = sadd.s32 1, %s1683_s17  ;;  %s32_s23 = sadd.s32 1, %s1687_s18 }
   0x9   : > { %p30_p0 = scmp.ge.s32.totalorder %s29_s22, 2  ;;  %p98_p1 = scmp.ne.s32.totalorder %s1671_s14, %s1667_s13 }
   0xa   : > { %p99_p2 = scmp.eq.s32.totalorder %s1317_s20, 3  ;;  %p104_p5 = scmp.ne.s32.totalorder %s1667_s13, %s1663_s12 }
   0xb   : > { %s2692_s22 = smov (%p30_p0, %s29_s22), 0  ;;  %s2694_s23 = smov (!%p30_p0, %s32_s23), %s1687_s18 }
   0xc   : > { %s84_s24 = ssub.s32 %s1683_s17, %s2692_s22  ;;  %p1766_p3 = por %p99_p2, %p98_p1 }
   0xd   : > { %p34_p4 = scmp.ge.s32.totalorder %s2694_s23, 2  ;;  %p105_p6 = scmp.eq.s32.totalorder %s1318_s21, 3 }
   0xe   : > { %p1321_p7 = scmp.ge.s32.totalorder %s1691_s19, 1  ;;  %p162_p9 = scmp.lt.s32.totalorder %s1691_s19, 5 }
   0xf   : > { %s2696_s23 = smov (%p34_p4, %s2694_s23), 0  ;;  %p1775_p8 = por %p105_p6, %p104_p5 }
  0x10   : > { %s83_s27 = ssub.s32 %s1687_s18, %s2696_s23  ;;  %s88_s28 = sadd.s32 1, %s1671_s14 }
  0x11   : > { %s85_s29 = sor.u32 %s84_s24, %s83_s27  ;;  %p163_p10 = pnand %p1321_p7, %p162_p9 }
  0x12   : > { %p86_p11 = scmp.eq.s32.totalorder %s85_s29, 0  ;;  %p191_p12 = scmp.lt.s32.totalorder (!%p163_p10), %s1679_s16, 1 }
  0x13   : > { %166 = sbr.rel (%p163_p10) target bundleno = 500 (0x1f4), region = 28  ;;  %s2573_s10 = sand.u32 (!%p163_p10), 1, %s1667_s13  }
  0x14   : > { %s1784_s30 = scalar_select %p86_p11, %s1671_s14, %s88_s28  }
  0x15   : > { %s1326_s4 = smul.u32 (!%p163_p10), 192, %s1675_s15  ;;  %s1322_s11 = sshll.u32 (!%p163_p10), %s2573_s10, 7 }
  0x16   : > { %s1431_s24 = sshll.u32 (!%p163_p10), %s1679_s16, 5  ;;  %s1157_s9 = scalar_lea.sflag (!%p163_p10), [#allocation3], %s2573_s10 }
  0x18   : > { %v365_v0 = vld [vmem:[%s2679_s1 + $0x78] sm:$0xff]  ;;  %v364_v1 = vld [vmem:[%s2679_s1 + $0x70] sm:$0xff]  ;;  %v363_v2 = vld [vmem:[%s2679_s1 + $0x68] sm:$0xff]  ;;  %s192_s8 = scalar_select %p191_p12, %s1679_s16, 1 }
  0x19   : > { %1438 = vmatpush.msra.mxu1 %v365_v0  ;;  %1439 = vmatpush.msra.mxu2 %v365_v0  ;;  %v362_v3 = vld [vmem:[%s2679_s1 + $0x60] sm:$0xff]  ;;  %v361_v4 = vld [vmem:[%s2679_s1 + $0x58] sm:$0xff]  ;;  %v360_v5 = vld [vmem:[%s2679_s1 + $0x50] sm:$0xff] }
  0x1a   : > { %1440 = vmatpush.msra.mxu3 %v365_v0  ;;  %494 = vmatpush.msra.mxu0 %v365_v0  ;;  %v359_v6 = vld [vmem:[%s2679_s1 + $0x48] sm:$0xff]  ;;  %v358_v7 = vld [vmem:[%s2679_s1 + $0x40] sm:$0xff]  ;;  %v357_v8 = vld [vmem:[%s2679_s1 + $0x38] sm:$0xff]  ;;  %s1486_s21 = smul.u32 480, %s192_s8  ;;  %s1433_s8 = sshll.u32 %s1679_s16, 1 }
  0x1b   : > { %1441 = vmatpush.msra.mxu1 %v364_v1  ;;  %1442 = vmatpush.msra.mxu2 %v364_v1  ;;  %v356_v9 = vld [vmem:[%s2679_s1 + $0x30] sm:$0xff]  ;;  %v355_v10 = vld [vmem:[%s2679_s1 + $0x28] sm:$0xff]  ;;  %v354_v11 = vld [vmem:[%s2679_s1 + $0x20] sm:$0xff] }
  0x1c   : > { %1443 = vmatpush.msra.mxu3 %v364_v1  ;;  %495 = vmatpush.msra.mxu0 %v364_v1  ;;  %v353_v12 = vld [vmem:[%s2679_s1 + $0x18] sm:$0xff]  ;;  %s195_s7 = scalar_lea.vmem %s2678_s0, %s1486_s21  ;;  %v352_v13 = vld [vmem:[%s2679_s1 + $0x10] sm:$0xff]  ;;  %v351_v14 = vld [vmem:[%s2679_s1 + $0x8] sm:$0xff]  ;;  %s1437_s21 = sshll.u32 %s1675_s15, 4 }
  0x1d   : > { %1444 = vmatpush.msra.mxu1 %v363_v2  ;;  %1445 = vmatpush.msra.mxu2 %v363_v2  ;;  %s1837_s20 = scalar_lea.vmem %s195_s7, %s1326_s4  ;;  %v350_v15 = vld [vmem:[%s2679_s1] sm:$0xff]  ;;  %v397_v18 = vld [vmem:[%s2679_s1 + $0x178] sm:$0xff]  ;;  %v396_v21 = vld [vmem:[%s2679_s1 + $0x170] sm:$0xff]  ;;  %s1174_s27 = sadd.s32 %s1437_s21, %s1431_s24 }
  0x1e   : > { %1446 = vmatpush.msra.mxu3 %v363_v2  ;;  %496 = vmatpush.msra.mxu0 %v363_v2  ;;  %v1843_v16 = vld [vmem:[%s1837_s20 + $0x30] sm:$0xff]  ;;  %v1846_v17 = vld [vmem:[%s1837_s20 + $0x60] sm:$0xff]  ;;  %v381_v19 = vld [vmem:[%s2679_s1 + $0xf8] sm:$0xff]  ;;  %s1432_s28 = sshll.u32 %s1174_s27, 3 }
  0x1f   : > { %1447 = vmatpush.msra.mxu1 %v362_v3  ;;  %1448 = vmatpush.msra.mxu2 %v362_v3  ;;  %v1855_v20 = vld [vmem:[%s1837_s20 + $0x90] sm:$0xff]  ;;  %v413_v22 = vld [vmem:[%s2679_s1 + $0x1f8] sm:$0xff]  ;;  %v395_v24 = vld [vmem:[%s2679_s1 + $0x168] sm:$0xff]  ;;  %s1176_s5 = scalar_lea.hbm %s2680_s2, %s1432_s28  ;;  %s1585_s28 = scalar_lea.hbm %s2680_s2, 512 }
  0x20   : > { %1449 = vmatpush.msra.mxu3 %v362_v3  ;;  %497 = vmatpush.msra.mxu0 %v362_v3  ;;  %v380_v23 = vld [vmem:[%s2679_s1 + $0xf0] sm:$0xff]  ;;  %v379_v26 = vld [vmem:[%s2679_s1 + $0xe8] sm:$0xff]  ;;  %v200_v27 = vld [vmem:[%s1837_s20] sm:$0xff]  ;;  %s1179_s7 = sshll.u32 %s1176_s5, 4  ;;  %s1180_s7 = int_to_ptr.hbm [resolvable:$true] %s1179_s7 }
  0x21   : > { %1450 = vmatpush.msra.mxu1 %v361_v4  ;;  %1451 = vmatpush.msra.mxu2 %v361_v4  ;;  %v412_v25 = vld [vmem:[%s2679_s1 + $0x1f0] sm:$0xff]  ;;  %v394_v28 = vld [vmem:[%s2679_s1 + $0x160] sm:$0xff]  ;;  %v411_v29 = vld [vmem:[%s2679_s1 + $0x1e8] sm:$0xff] }
  0x22   : > { %1452 = vmatpush.msra.mxu3 %v361_v4  ;;  %498 = vmatpush.msra.mxu0 %v361_v4  ;;  %v378_v30 = vld [vmem:[%s2679_s1 + $0xe0] sm:$0xff]  ;;  %v1889_v31 = vld [vmem:[%s1837_s20 + $0x68] sm:$0xff]  ;;  %v1892_v32 = vld [vmem:[%s1837_s20 + $0x38] sm:$0xff] }
  0x23   : > { %1453 = vmatpush.msra.mxu1 %v360_v5  ;;  %1454 = vmatpush.msra.mxu2 %v360_v5  ;;  %v393_v33 = vld [vmem:[%s2679_s1 + $0x158] sm:$0xff]  ;;  %v410_v34 = vld [vmem:[%s2679_s1 + $0x1e0] sm:$0xff]  ;;  %v392_v37 = vld [vmem:[%s2679_s1 + $0x150] sm:$0xff] }
  0x24   : > { %1455 = vmatpush.msra.mxu3 %v360_v5  ;;  %499 = vmatpush.msra.mxu0 %v360_v5  ;;  %v377_v35 = vld [vmem:[%s2679_s1 + $0xd8] sm:$0xff]  ;;  %v376_v40 = vld [vmem:[%s2679_s1 + $0xd0] sm:$0xff]  ;;  %v391_v41 = vld [vmem:[%s2679_s1 + $0x148] sm:$0xff] }
  0x25   : > { %1456 = vmatpush.msra.mxu1 %v359_v6  ;;  %1457 = vmatpush.msra.mxu2 %v359_v6  ;;  %v1905_v36 = vld [vmem:[%s1837_s20 + $0x98] sm:$0xff]  ;;  %v408_v42 = vld [vmem:[%s2679_s1 + $0x1d0] sm:$0xff]  ;;  %v375_v44 = vld [vmem:[%s2679_s1 + $0xc8] sm:$0xff] }
  0x26   : > { %1458 = vmatpush.msra.mxu3 %v359_v6  ;;  %500 = vmatpush.msra.mxu0 %v359_v6  ;;  %v409_v38 = vld [vmem:[%s2679_s1 + $0x1d8] sm:$0xff]  ;;  %v428_v43 = vld [vmem:[%s2679_s1 + $0x270] sm:$0xff]  ;;  %v390_v45 = vld [vmem:[%s2679_s1 + $0x140] sm:$0xff] }
  0x27   : > { %1459 = vmatpush.msra.mxu1 %v358_v7  ;;  %1460 = vmatpush.msra.mxu2 %v358_v7  ;;  %v429_v39 = vld [vmem:[%s2679_s1 + $0x278] sm:$0xff]  ;;  %v407_v46 = vld [vmem:[%s2679_s1 + $0x1c8] sm:$0xff]  ;;  %v374_v48 = vld [vmem:[%s2679_s1 + $0xc0] sm:$0xff] }
  0x28   : > { %1461 = vmatpush.msra.mxu3 %v358_v7  ;;  %501 = vmatpush.msra.mxu0 %v358_v7  ;;  %v427_v47 = vld [vmem:[%s2679_s1 + $0x268] sm:$0xff]  ;;  %v1946_v49 = vld [vmem:[%s1837_s20 + $0x78] sm:$0xff]  ;;  %v406_v52 = vld [vmem:[%s2679_s1 + $0x1c0] sm:$0xff] }
  0x29   : > { %1462 = vmatpush.msra.mxu1 %v357_v8  ;;  %1463 = vmatpush.msra.mxu2 %v357_v8  ;;  %v1949_v50 = vld [vmem:[%s1837_s20 + $0x48] sm:$0xff]  ;;  %v389_v51 = vld [vmem:[%s2679_s1 + $0x138] sm:$0xff]  ;;  %v426_v53 = vld [vmem:[%s2679_s1 + $0x260] sm:$0xff] }
  0x2a   : > { %1464 = vmatpush.msra.mxu3 %v357_v8  ;;  %502 = vmatpush.msra.mxu0 %v357_v8  ;;  %v373_v54 = vld [vmem:[%s2679_s1 + $0xb8] sm:$0xff]  ;;  %v201_v55 = vld [vmem:[%s1837_s20 + $0x8] sm:$0xff]  ;;  %v388_v57 = vld [vmem:[%s2679_s1 + $0x130] sm:$0xff] }
  0x2b   : > { %1465 = vmatpush.msra.mxu1 %v356_v9  ;;  %1466 = vmatpush.msra.mxu2 %v356_v9  ;;  %v1967_v56 = vld [vmem:[%s1837_s20 + $0xa8] sm:$0xff]  ;;  %v405_v58 = vld [vmem:[%s2679_s1 + $0x1b8] sm:$0xff]  ;;  %v372_v60 = vld [vmem:[%s2679_s1 + $0xb0] sm:$0xff] }
  0x2c   : > { %1467 = vmatpush.msra.mxu3 %v356_v9  ;;  %503 = vmatpush.msra.mxu0 %v356_v9  ;;  %v425_v59 = vld [vmem:[%s2679_s1 + $0x258] sm:$0xff]  ;;  %v387_v61 = vld [vmem:[%s2679_s1 + $0x128] sm:$0xff]  ;;  %v404_v62 = vld [vmem:[%s2679_s1 + $0x1b0] sm:$0xff] }
  0x2d   : > { %1468 = vmatpush.msra.mxu1 %v355_v10  ;;  %1469 = vmatpush.msra.mxu2 %v355_v10  ;;  %v424_v63 = vld [vmem:[%s2679_s1 + $0x250] sm:$0xff]  ;;  %v371_v0 = vld [vmem:[%s2679_s1 + $0xa8] sm:$0xff]  ;;  %v386_v1 = vld [vmem:[%s2679_s1 + $0x120] sm:$0xff] }
  0x2e   : > { %1470 = vmatpush.msra.mxu3 %v355_v10  ;;  %504 = vmatpush.msra.mxu0 %v355_v10  ;;  %v403_v2 = vld [vmem:[%s2679_s1 + $0x1a8] sm:$0xff]  ;;  %v370_v4 = vld [vmem:[%s2679_s1 + $0xa0] sm:$0xff]  ;;  %v2010_v6 = vld [vmem:[%s1837_s20 + $0x50] sm:$0xff] }
  0x2f   : > { %1471 = vmatpush.msra.mxu1 %v354_v11  ;;  %1472 = vmatpush.msra.mxu2 %v354_v11  ;;  %v423_v3 = vld [vmem:[%s2679_s1 + $0x248] sm:$0xff]  ;;  %v2007_v5 = vld [vmem:[%s1837_s20 + $0x80] sm:$0xff]  ;;  %v385_v7 = vld [vmem:[%s2679_s1 + $0x118] sm:$0xff] }
  0x30   : > { %1473 = vmatpush.msra.mxu3 %v354_v11  ;;  %505 = vmatpush.msra.mxu0 %v354_v11  ;;  %v402_v8 = vld [vmem:[%s2679_s1 + $0x1a0] sm:$0xff]  ;;  %v369_v10 = vld [vmem:[%s2679_s1 + $0x98] sm:$0xff] }
  0x31   : > { %1474 = vmatpush.msra.mxu1 %v353_v12  ;;  %1475 = vmatpush.msra.mxu2 %v353_v12  ;;  %v422_v9 = vld [vmem:[%s2679_s1 + $0x240] sm:$0xff]  ;;  %v202_v11 = vld [vmem:[%s1837_s20 + $0x18] sm:$0xff] }
  0x32   : > { %1476 = vmatpush.msra.mxu3 %v353_v12  ;;  %506 = vmatpush.msra.mxu0 %v353_v12  ;;  %v2028_v12 = vld [vmem:[%s1837_s20 + $0xb0] sm:$0xff] }
  0x33   : > { %1477 = vmatpush.msra.mxu1 %v352_v13  ;;  %1478 = vmatpush.msra.mxu2 %v352_v13 }
  0x34   : > { %1479 = vmatpush.msra.mxu3 %v352_v13  ;;  %507 = vmatpush.msra.mxu0 %v352_v13  ;;  %v384_v13 = vld [vmem:[%s2679_s1 + $0x110] sm:$0xff] }
  0x35   : > { %1480 = vmatpush.msra.mxu1 %v351_v14  ;;  %1481 = vmatpush.msra.mxu2 %v351_v14 }
  0x36   : > { %1482 = vmatpush.msra.mxu3 %v351_v14  ;;  %508 = vmatpush.msra.mxu0 %v351_v14  ;;  %v401_v14 = vld [vmem:[%s2679_s1 + $0x198] sm:$0xff] }
  0x37   : > { %1483 = vmatpush.msra.mxu1 %v350_v15  ;;  %1484 = vmatpush.msra.mxu2 %v350_v15 }
  0x38   : > { %522 = vmatmul.f32.vlgmr.msra.gmra.mxu1 %v1843_v16  ;;  %534 = vmatmul.f32.vlgmr.msra.gmra.mxu2 %v1846_v17 }
  0x39   : > { %624 = vmatpush.msrb.mxu2 %v397_v18  ;;  %1485 = vmatpush.msra.mxu3 %v350_v15  ;;  %v368_v18 = vld [vmem:[%s2679_s1 + $0x90] sm:$0xff] }
  0x3a   : > { %559 = vmatpush.msrb.mxu1 %v381_v19  ;;  %546 = vmatmul.f32.vlgmr.msra.gmra.mxu3 %v1855_v20  ;;  %v383_v19 = vld [vmem:[%s2679_s1 + $0x108] sm:$0xff] }
  0x3b   : > { %625 = vmatpush.msrb.mxu2 %v396_v21  ;;  %689 = vmatpush.msrb.mxu3 %v413_v22  ;;  %v400_v21 = vld [vmem:[%s2679_s1 + $0x190] sm:$0xff] }
  0x3c   : > { %560 = vmatpush.msrb.mxu1 %v380_v23  ;;  %509 = vmatpush.msra.mxu0 %v350_v15  ;;  %v421_v15 = vld [vmem:[%s2679_s1 + $0x238] sm:$0xff]  ;;  %v420_v22 = vld [vmem:[%s2679_s1 + $0x230] sm:$0xff]  ;;  %v367_v23 = vld [vmem:[%s2679_s1 + $0x88] sm:$0xff] }
  0x3d   : > { %626 = vmatpush.msrb.mxu2 %v395_v24  ;;  %690 = vmatpush.msrb.mxu3 %v412_v25  ;;  %v382_v24 = vld [vmem:[%s2679_s1 + $0x100] sm:$0xff]  ;;  %v399_v25 = vld [vmem:[%s2679_s1 + $0x188] sm:$0xff] }
  0x3e   : > { %561 = vmatpush.msrb.mxu1 %v379_v26  ;;  %510 = vmatmul.f32.vlgmr.msra.gmra.mxu0 %v200_v27  ;;  %v419_v26 = vld [vmem:[%s2679_s1 + $0x228] sm:$0xff]  ;;  %v366_v27 = vld [vmem:[%s2679_s1 + $0x80] sm:$0xff] }
  0x3f   : > { %627 = vmatpush.msrb.mxu2 %v394_v28  ;;  %691 = vmatpush.msrb.mxu3 %v411_v29  ;;  %v232_v28 = vld [vmem:[%s1837_s20 + $0x4] sm:$0xff] }
  0x40   : > { %562 = vmatpush.msrb.mxu1 %v378_v30  ;;  %537 = vmatmul.f32.gmra.mxu2 %v1889_v31  ;;  %v216_v29 = vld [vmem:[%s1837_s20 + $0x2] sm:$0xff] }
  0x41   : > { %525 = vmatmul.f32.gmra.mxu1 %v1892_v32  ;;  %628 = vmatpush.msrb.mxu2 %v393_v33  ;;  %v398_v30 = vld [vmem:[%s2679_s1 + $0x180] sm:$0xff] }
  0x42   : > { %692 = vmatpush.msrb.mxu3 %v410_v34  ;;  %563 = vmatpush.msrb.mxu1 %v377_v35  ;;  %v418_v33 = vld [vmem:[%s2679_s1 + $0x220] sm:$0xff]  ;;  %v461_v34 = vld [vmem:[%s2679_s1 + $0x378] sm:$0xff] }
  0x43   : > { %549 = vmatmul.f32.gmra.mxu3 %v1905_v36  ;;  %629 = vmatpush.msrb.mxu2 %v392_v37  ;;  %v203_v35 = vld [vmem:[%s1837_s20 + $0x20] sm:$0xff]  ;;  %v417_v37 = vld [vmem:[%s2679_s1 + $0x218] sm:$0xff] }
  0x44   : > { %693 = vmatpush.msrb.mxu3 %v409_v38  ;;  %754 = vmatpush.msrb.mxu0 %v429_v39  ;;  %v477_v38 = vld [vmem:[%s2679_s1 + $0x3f8] sm:$0xff] }
  0x45   : > { %564 = vmatpush.msrb.mxu1 %v376_v40  ;;  %630 = vmatpush.msrb.mxu2 %v391_v41  ;;  %v445_v39 = vld [vmem:[%s2679_s1 + $0x2f8] sm:$0xff]  ;;  %v460_v40 = vld [vmem:[%s2679_s1 + $0x370] sm:$0xff] }
  0x46   : > { %694 = vmatpush.msrb.mxu3 %v408_v42  ;;  %755 = vmatpush.msrb.mxu0 %v428_v43  ;;  %v416_v41 = vld [vmem:[%s2679_s1 + $0x210] sm:$0xff] }
  0x47   : > { %565 = vmatpush.msrb.mxu1 %v375_v44  ;;  %631 = vmatpush.msrb.mxu2 %v390_v45  ;;  %v476_v42 = vld [vmem:[%s2679_s1 + $0x3f0] sm:$0xff]  ;;  %v459_v44 = vld [vmem:[%s2679_s1 + $0x368] sm:$0xff] }
  0x48   : > { %695 = vmatpush.msrb.mxu3 %v407_v46  ;;  %756 = vmatpush.msrb.mxu0 %v427_v47  ;;  %v444_v43 = vld [vmem:[%s2679_s1 + $0x2f0] sm:$0xff]  ;;  %v475_v47 = vld [vmem:[%s2679_s1 + $0x3e8] sm:$0xff] }
  0x49   : > { %566 = vmatpush.msrb.mxu1 %v374_v48  ;;  %540 = vmatmul.f32.gmra.mxu2 %v1946_v49  ;;  %v233_v45 = vld [vmem:[%s1837_s20 + $0xc] sm:$0xff]  ;;  %v414_v48 = vld [vmem:[%s2679_s1 + $0x200] sm:$0xff] }
  0x4a   : > { %528 = vmatmul.f32.gmra.mxu1 %v1949_v50  ;;  %632 = vmatpush.msrb.mxu2 %v389_v51  ;;  %v217_v46 = vld [vmem:[%s1837_s20 + $0xa] sm:$0xff] }
  0x4b   : > { %696 = vmatpush.msrb.mxu3 %v406_v52  ;;  %757 = vmatpush.msrb.mxu0 %v426_v53  ;;  %v443_v51 = vld [vmem:[%s2679_s1 + $0x2e8] sm:$0xff]  ;;  %v2119_v52 = vld [vmem:[%s1837_s20 + $0x32] sm:$0xff] }
  0x4c   : > { %567 = vmatpush.msrb.mxu1 %v373_v54  ;;  %513 = vmatmul.f32.gmra.mxu0 %v201_v55  ;;  %v493_v53 = vld [vmem:[%s2679_s1 + $0x478] sm:$0xff]  ;;  %v458_v54 = vld [vmem:[%s2679_s1 + $0x360] sm:$0xff] }
  0x4d   : > { %552 = vmatmul.f32.gmra.mxu3 %v1967_v56  ;;  %633 = vmatpush.msrb.mxu2 %v388_v57  ;;  %v474_v55 = vld [vmem:[%s2679_s1 + $0x3e0] sm:$0xff] }
  0x4e   : > { %697 = vmatpush.msrb.mxu3 %v405_v58  ;;  %758 = vmatpush.msrb.mxu0 %v425_v59  ;;  %v442_v57 = vld [vmem:[%s2679_s1 + $0x2e0] sm:$0xff]  ;;  %v492_v58 = vld [vmem:[%s2679_s1 + $0x470] sm:$0xff]  ;;  %v457_v59 = vld [vmem:[%s2679_s1 + $0x358] sm:$0xff] }
  0x4f   : > { %568 = vmatpush.msrb.mxu1 %v372_v60  ;;  %634 = vmatpush.msrb.mxu2 %v387_v61  ;;  %v473_v60 = vld [vmem:[%s2679_s1 + $0x3d8] sm:$0xff] }
  0x50   : > { %698 = vmatpush.msrb.mxu3 %v404_v62  ;;  %759 = vmatpush.msrb.mxu0 %v424_v63  ;;  %v234_v61 = vld [vmem:[%s1837_s20 + $0x1c] sm:$0xff]  ;;  %v491_v62 = vld [vmem:[%s2679_s1 + $0x468] sm:$0xff] }
  0x51   : > { %569 = vmatpush.msrb.mxu1 %v371_v0  ;;  %635 = vmatpush.msrb.mxu2 %v386_v1  ;;  %v218_v63 = vld [vmem:[%s1837_s20 + $0x1a] sm:$0xff]  ;;  %v456_v0 = vld [vmem:[%s2679_s1 + $0x350] sm:$0xff] }
  0x52   : > { %699 = vmatpush.msrb.mxu3 %v403_v2  ;;  %760 = vmatpush.msrb.mxu0 %v423_v3  ;;  %v490_v1 = vld [vmem:[%s2679_s1 + $0x460] sm:$0xff]  ;;  %v472_v2 = vld [vmem:[%s2679_s1 + $0x3d0] sm:$0xff] }
  0x53   : > { %570 = vmatpush.msrb.mxu1 %v370_v4  ;;  %543 = vmatmul.f32.gmra.mxu2 %v2007_v5  ;;  %v1346_v3 = vld [vmem:[%s1837_s20 + $0x3a] sm:$0xff] }
  0x54   : > { %531 = vmatmul.f32.gmra.mxu1 %v2010_v6  ;;  %636 = vmatpush.msrb.mxu2 %v385_v7  ;;  %v489_v4 = vld [vmem:[%s2679_s1 + $0x458] sm:$0xff]  ;;  %v440_v7 = vld [vmem:[%s2679_s1 + $0x2d0] sm:$0xff] }
  0x55   : > { %700 = vmatpush.msrb.mxu3 %v402_v8  ;;  %761 = vmatpush.msrb.mxu0 %v422_v9  ;;  %v455_v8 = vld [vmem:[%s2679_s1 + $0x348] sm:$0xff] }
  0x56   : > { %571 = vmatpush.msrb.mxu1 %v369_v10  ;;  %516 = vmatmul.f32.gmra.mxu0 %v202_v11  ;;  %v471_v9 = vld [vmem:[%s2679_s1 + $0x3c8] sm:$0xff]  ;;  %v488_v10 = vld [vmem:[%s2679_s1 + $0x450] sm:$0xff] }
  0x57   : > { %555 = vmatmul.f32.gmra.mxu3 %v2028_v12  ;;  %637 = vmatpush.msrb.mxu2 %v384_v13  ;;  %v439_v11 = vld [vmem:[%s2679_s1 + $0x2c8] sm:$0xff] }
  0x58   : > { %701 = vmatpush.msrb.mxu3 %v401_v14  ;;  %762 = vmatpush.msrb.mxu0 %v421_v15  ;;  %v235_v13 = vld [vmem:[%s1837_s20 + $0x24] sm:$0xff] }
  0x59   : > { %572 = vmatpush.msrb.mxu1 %v368_v18  ;;  %638 = vmatpush.msrb.mxu2 %v383_v19  ;;  %v1347_v14 = vld [vmem:[%s1837_s20 + $0x4a] sm:$0xff]  ;;  %v454_v15 = vld [vmem:[%s2679_s1 + $0x340] sm:$0xff] }
  0x5a   : > { %702 = vmatpush.msrb.mxu3 %v400_v21  ;;  %763 = vmatpush.msrb.mxu0 %v420_v22  ;;  %v470_v18 = vld [vmem:[%s2679_s1 + $0x3c0] sm:$0xff]  ;;  %v487_v19 = vld [vmem:[%s2679_s1 + $0x448] sm:$0xff]  ;;  %v2198_v22 = vld [vmem:[%s1837_s20 + $0x34] sm:$0xff] }
  0x5b   : > { %573 = vmatpush.msrb.mxu1 %v367_v23  ;;  %639 = vmatpush.msrb.mxu2 %v382_v24  ;;  %v438_v21 = vld [vmem:[%s2679_s1 + $0x2c0] sm:$0xff]  ;;  %v453_v23 = vld [vmem:[%s2679_s1 + $0x338] sm:$0xff] }
  0x5c   : > { %703 = vmatpush.msrb.mxu3 %v399_v25  ;;  %764 = vmatpush.msrb.mxu0 %v419_v26  ;;  %v469_v24 = vld [vmem:[%s2679_s1 + $0x3b8] sm:$0xff]  ;;  %v486_v25 = vld [vmem:[%s2679_s1 + $0x440] sm:$0xff] }
  0x5d   : > { %574 = vmatpush.msrb.mxu1 %v366_v27  ;;  %640 = vmatmul.f32.vlgmr.msrb.gmra.mxu2 %v232_v28  ;;  %v437_v26 = vld [vmem:[%s2679_s1 + $0x2b8] sm:$0xff]  ;;  %v2221_v28 = vld [vmem:[%s1837_s20 + $0x62] sm:$0xff] }
  0x5e   : > { %575 = vmatmul.f32.vlgmr.msrb.gmra.mxu1 %v216_v29  ;;  %704 = vmatpush.msrb.mxu3 %v398_v30  ;;  %v2217_v27 = vld [vmem:[%s1837_s20 + $0x3c] sm:$0xff]  ;;  %v452_v29 = vld [vmem:[%s2679_s1 + $0x330] sm:$0xff] }
  0x5f   : > { %765 = vmatpush.msrb.mxu0 %v418_v33  ;;  %884 = vmatpush.msra.mxu2 %v461_v34  ;;  %v468_v30 = vld [vmem:[%s2679_s1 + $0x3b0] sm:$0xff]  ;;  %v485_v33 = vld [vmem:[%s2679_s1 + $0x438] sm:$0xff] }
  0x60   : > { %519 = vmatmul.f32.gmra.mxu0 %v203_v35  ;;  %705 = vmatmul.f32.vlgmr.msrb.gmra.mxu3 %v1843_v16  ;;  %v415_v16 = vld [vmem:[%s2679_s1 + $0x208] sm:$0xff]  ;;  %v436_v34 = vld [vmem:[%s2679_s1 + $0x2b0] sm:$0xff] }
  0x61   : > { %766 = vmatpush.msrb.mxu0 %v417_v37  ;;  %949 = vmatpush.msra.mxu3 %v477_v38  ;;  %v2238_v35 = vld [vmem:[%s1837_s20 + $0x4c] sm:$0xff] }
  0x62   : > { %819 = vmatpush.msra.mxu1 %v445_v39  ;;  %885 = vmatpush.msra.mxu2 %v460_v40  ;;  %v2242_v37 = vld [vmem:[%s1837_s20 + $0x6a] sm:$0xff] }
  0x63   : > { %767 = vmatpush.msrb.mxu0 %v416_v41  ;;  %950 = vmatpush.msra.mxu3 %v476_v42  ;;  %v451_v38 = vld [vmem:[%s2679_s1 + $0x328] sm:$0xff]  ;;  %v484_v40 = vld [vmem:[%s2679_s1 + $0x430] sm:$0xff] }
  0x64   : > { %820 = vmatpush.msra.mxu1 %v444_v43  ;;  %886 = vmatpush.msra.mxu2 %v459_v44  ;;  %v467_v39 = vld [vmem:[%s2679_s1 + $0x3a8] sm:$0xff]  ;;  %v2259_v42 = vld [vmem:[%s1837_s20 + $0x54] sm:$0xff]  ;;  %v450_v44 = vld [vmem:[%s2679_s1 + $0x320] sm:$0xff] }
  0x65   : > { %768 = vmatpush.msrb.mxu0 %v415_v16  ;;  %643 = vmatmul.f32.gmra.mxu2 %v233_v45  ;;  %v435_v41 = vld [vmem:[%s2679_s1 + $0x2a8] sm:$0xff]  ;;  %v2263_v43 = vld [vmem:[%s1837_s20 + $0x7a] sm:$0xff] }
  0x66   : > { %578 = vmatmul.f32.gmra.mxu1 %v217_v46  ;;  %951 = vmatpush.msra.mxu3 %v475_v47  ;;  %v466_v16 = vld [vmem:[%s2679_s1 + $0x3a0] sm:$0xff]  ;;  %v483_v45 = vld [vmem:[%s2679_s1 + $0x428] sm:$0xff] }
  0x67   : > { %769 = vmatpush.msrb.mxu0 %v414_v48  ;;  %821 = vmatpush.msra.mxu1 %v443_v51  ;;  %v434_v46 = vld [vmem:[%s2679_s1 + $0x2a0] sm:$0xff]  ;;  %v449_v51 = vld [vmem:[%s2679_s1 + $0x318] sm:$0xff] }
  0x68   : > { %708 = vmatmul.f32.gmra.mxu3 %v1892_v32  ;;  %770 = vmatmul.f32.vlgmr.msrb.gmra.mxu0 %v2119_v52  ;;  %v441_v32 = vld [vmem:[%s2679_s1 + $0x2d8] sm:$0xff]  ;;  %v2280_v47 = vld [vmem:[%s1837_s20 + $0x64] sm:$0xff] }
  0x69   : > { %1014 = vmatpush.msra.mxu0 %v493_v53  ;;  %887 = vmatpush.msra.mxu2 %v458_v54  ;;  %v2284_v48 = vld [vmem:[%s1837_s20 + $0x82] sm:$0xff]  ;;  %v433_v54 = vld [vmem:[%s2679_s1 + $0x298] sm:$0xff] }
  0x6a   : > { %952 = vmatpush.msra.mxu3 %v474_v55  ;;  %822 = vmatpush.msra.mxu1 %v442_v57  ;;  %v482_v53 = vld [vmem:[%s2679_s1 + $0x420] sm:$0xff]  ;;  %v2302_v55 = vld [vmem:[%s1837_s20 + $0x6c] sm:$0xff] }
  0x6b   : > { %1015 = vmatpush.msra.mxu0 %v492_v58  ;;  %888 = vmatpush.msra.mxu2 %v457_v59  ;;  %v2306_v57 = vld [vmem:[%s1837_s20 + $0x92] sm:$0xff] }
  0x6c   : > { %953 = vmatpush.msra.mxu3 %v473_v60  ;;  %823 = vmatpush.msra.mxu1 %v441_v32  ;;  %v448_v58 = vld [vmem:[%s2679_s1 + $0x310] sm:$0xff]  ;;  %v481_v60 = vld [vmem:[%s2679_s1 + $0x418] sm:$0xff] }
  0x6d   : > { %646 = vmatmul.f32.gmra.mxu2 %v234_v61  ;;  %1016 = vmatpush.msra.mxu0 %v491_v62  ;;  %v464_v59 = vld [vmem:[%s2679_s1 + $0x390] sm:$0xff]  ;;  %v2324_v61 = vld [vmem:[%s1837_s20 + $0x7c] sm:$0xff] }
  0x6e   : > { %581 = vmatmul.f32.gmra.mxu1 %v218_v63  ;;  %889 = vmatpush.msra.mxu2 %v456_v0  ;;  %v432_v32 = vld [vmem:[%s2679_s1 + $0x290] sm:$0xff]  ;;  %v2328_v62 = vld [vmem:[%s1837_s20 + $0x9a] sm:$0xff]  ;;  %v447_v63 = vld [vmem:[%s2679_s1 + $0x308] sm:$0xff] }
  0x6f   : > { %1017 = vmatpush.msra.mxu0 %v490_v1  ;;  %954 = vmatpush.msra.mxu3 %v472_v2  ;;  %v463_v0 = vld [vmem:[%s2679_s1 + $0x388] sm:$0xff]  ;;  %v480_v1 = vld [vmem:[%s2679_s1 + $0x410] sm:$0xff] }
  0x70   : > { %711 = vmatmul.f32.gmra.mxu3 %v1949_v50  ;;  %773 = vmatmul.f32.gmra.mxu0 %v1346_v3  ;;  %v219_v50 = vld [vmem:[%s1837_s20 + $0x22] sm:$0xff] }
  0x71   : > { %1018 = vmatpush.msra.mxu0 %v489_v4  ;;  %824 = vmatpush.msra.mxu1 %v440_v7  ;;  %v431_v2 = vld [vmem:[%s2679_s1 + $0x288] sm:$0xff] }
  0x72   : > { %890 = vmatpush.msra.mxu2 %v455_v8  ;;  %955 = vmatpush.msra.mxu3 %v471_v9  ;;  %v2350_v4 = vld [vmem:[%s1837_s20 + $0xaa] sm:$0xff]  ;;  %v446_v8 = vld [vmem:[%s2679_s1 + $0x300] sm:$0xff] }
  0x73   : > { %1019 = vmatpush.msra.mxu0 %v488_v10  ;;  %825 = vmatpush.msra.mxu1 %v439_v11  ;;  %v462_v9 = vld [vmem:[%s2679_s1 + $0x380] sm:$0xff]  ;;  %v479_v10 = vld [vmem:[%s2679_s1 + $0x408] sm:$0xff] }
  0x74   : > { %891 = vmatpush.msra.mxu2 %v454_v15  ;;  %956 = vmatpush.msra.mxu3 %v470_v18  ;;  %v430_v11 = vld [vmem:[%s2679_s1 + $0x280] sm:$0xff]  ;;  %v2379_v15 = vld [vmem:[%s1837_s20 + $0xb2] sm:$0xff] }
  0x75   : > { %649 = vmatmul.f32.gmra.mxu2 %v235_v13  ;;  %1020 = vmatpush.msra.mxu0 %v487_v19  ;;  %v2370_v13 = vld [vmem:[%s1837_s20 + $0x94] sm:$0xff] }
  0x76   : > { %584 = vmatmul.f32.gmra.mxu1 %v219_v50  ;;  %892 = vmatpush.msra.mxu2 %v453_v23  ;;  %v2392_v23 = vld [vmem:[%s1837_s20 + $0x9c] sm:$0xff] }
  0x77   : > { %826 = vmatpush.msra.mxu1 %v438_v21  ;;  %957 = vmatpush.msra.mxu3 %v469_v24 }
  0x78   : > { %714 = vmatmul.f32.gmra.mxu3 %v2010_v6  ;;  %776 = vmatmul.f32.gmra.mxu0 %v1347_v14  ;;  %v1348_v6 = vld [vmem:[%s1837_s20 + $0x52] sm:$0xff] }
  0x79   : > { %1021 = vmatpush.msra.mxu0 %v486_v25  ;;  %827 = vmatpush.msra.mxu1 %v437_v26  ;;  %v2398_v25 = vld [vmem:[%s1837_s20 + $0xc8] sm:$0xff] }
  0x7a   : > { %893 = vmatpush.msra.mxu2 %v452_v29  ;;  %958 = vmatpush.msra.mxu3 %v468_v30  ;;  %v2401_v26 = vld [vmem:[%s1837_s20 + $0xc2] sm:$0xff] }
  0x7b   : > { %1022 = vmatpush.msra.mxu0 %v485_v33  ;;  %828 = vmatpush.msra.mxu1 %v436_v34  ;;  %v2411_v34 = vld [vmem:[%s1837_s20 + $0xac] sm:$0xff] }
  0x7c   : > { %894 = vmatpush.msra.mxu2 %v451_v38  ;;  %959 = vmatpush.msra.mxu3 %v467_v39  ;;  %v2417_v39 = vld [vmem:[%s1837_s20 + $0xd8] sm:$0xff] }
  0x7d   : > { %652 = vmatmul.f32.gmra.mxu2 %v2198_v22  ;;  %1023 = vmatpush.msra.mxu0 %v484_v40  ;;  %v2420_v40 = vld [vmem:[%s1837_s20 + $0xca] sm:$0xff] }
  0x7e   : > { %587 = vmatmul.f32.gmra.mxu1 %v2119_v52  ;;  %895 = vmatpush.msra.mxu2 %v450_v44  ;;  %v465_v52 = vld [vmem:[%s2679_s1 + $0x398] sm:$0xff] }
  0x7f   : > { %829 = vmatpush.msra.mxu1 %v435_v41  ;;  %960 = vmatpush.msra.mxu3 %v466_v16  ;;  %v2430_v16 = vld [vmem:[%s1837_s20 + $0xb4] sm:$0xff] }
  0x80   : > { %717 = vmatmul.f32.gmra.mxu3 %v1846_v17  ;;  %779 = vmatmul.f32.gmra.mxu0 %v1348_v6 }
  0x81   : > { %1024 = vmatpush.msra.mxu0 %v483_v45  ;;  %830 = vmatpush.msra.mxu1 %v434_v46  ;;  %v2434_v46 = vld [vmem:[%s1837_s20 + $0xe0] sm:$0xff] }
  0x82   : > { %896 = vmatpush.msra.mxu2 %v449_v51  ;;  %961 = vmatpush.msra.mxu3 %v465_v52  ;;  %v2437_v51 = vld [vmem:[%s1837_s20 + $0xda] sm:$0xff] }
  0x83   : > { %1025 = vmatpush.msra.mxu0 %v482_v53  ;;  %831 = vmatpush.msra.mxu1 %v433_v54 }
  0x84   : > { %897 = vmatpush.msra.mxu2 %v448_v58  ;;  %962 = vmatpush.msra.mxu3 %v464_v59  ;;  %v2448_v59 = vld [vmem:[%s1837_s20 + $0xe2] sm:$0xff] }
  0x85   : > { %655 = vmatmul.f32.gmra.mxu2 %v2217_v27  ;;  %1026 = vmatpush.msra.mxu0 %v481_v60 }
  0x86   : > { %590 = vmatmul.f32.gmra.mxu1 %v1346_v3  ;;  %898 = vmatpush.msra.mxu2 %v447_v63  ;;  %v2346_v3 = vld [vmem:[%s1837_s20 + $0x84] sm:$0xff] }
  0x87   : > { %832 = vmatpush.msra.mxu1 %v432_v32  ;;  %963 = vmatpush.msra.mxu3 %v463_v0 }
  0x88   : > { %720 = vmatmul.f32.gmra.mxu3 %v1889_v31  ;;  %782 = vmatmul.f32.gmra.mxu0 %v2221_v28 }
  0x89   : > { %1027 = vmatpush.msra.mxu0 %v480_v1  ;;  %833 = vmatpush.msra.mxu1 %v431_v2 }
  0x8a   : > { %899 = vmatpush.msra.mxu2 %v446_v8  ;;  %964 = vmatpush.msra.mxu3 %v462_v9 }
  0x8b   : > { %1028 = vmatpush.msra.mxu0 %v479_v10  ;;  %834 = vmatpush.msra.mxu1 %v430_v11 }
  0x8d   : > { %658 = vmatmul.f32.gmra.mxu2 %v2238_v35 }
  0x8e   : > { %593 = vmatmul.f32.gmra.mxu1 %v1347_v14  ;;  %v2376_v14 = vld [vmem:[%s1837_s20 + $0xc0] sm:$0xff] }
  0x90   : > { %723 = vmatmul.f32.gmra.mxu3 %v1946_v49  ;;  %785 = vmatmul.f32.gmra.mxu0 %v2242_v37 }
  0x95   : > { %661 = vmatmul.f32.gmra.mxu2 %v2259_v42 }
  0x96   : > { %596 = vmatmul.f32.gmra.mxu1 %v1348_v6  ;;  %v478_v6 = vld [vmem:[%s2679_s1 + $0x400] sm:$0xff] }
  0x97   : > { %1029 = vmatpush.msra.mxu0 %v478_v6 }
  0x98   : > { %726 = vmatmul.f32.gmra.mxu3 %v2007_v5  ;;  %788 = vmatmul.f32.gmra.mxu0 %v2263_v43 }
  0x9d   : > { %664 = vmatmul.f32.gmra.mxu2 %v2280_v47 }
  0x9e   : > { %599 = vmatmul.f32.gmra.mxu1 %v2221_v28 }
  0xa0   : > { %729 = vmatmul.f32.gmra.mxu3 %v1855_v20  ;;  %791 = vmatmul.f32.gmra.mxu0 %v2284_v48 }
  0xa5   : > { %667 = vmatmul.f32.gmra.mxu2 %v2302_v55 }
  0xa6   : > { %602 = vmatmul.f32.gmra.mxu1 %v2242_v37 }
  0xa8   : > { %732 = vmatmul.f32.gmra.mxu3 %v1905_v36  ;;  %794 = vmatmul.f32.gmra.mxu0 %v2306_v57 }
  0xad   : > { %670 = vmatmul.f32.gmra.mxu2 %v2324_v61 }
  0xae   : > { %605 = vmatmul.f32.gmra.mxu1 %v2263_v43 }
  0xb0   : > { %735 = vmatmul.f32.gmra.mxu3 %v1967_v56  ;;  %797 = vmatmul.f32.gmra.mxu0 %v2328_v62 }
  0xb5   : > { %673 = vmatmul.f32.gmra.mxu2 %v2346_v3  ;;  %v2352_v7 = vpop.f32.mrf.mxu1 }
  0xb6   : > { %608 = vmatmul.f32.gmra.mxu1 %v2284_v48 }
  0xb8   : > { %738 = vmatmul.f32.gmra.mxu3 %v2028_v12  ;;  %800 = vmatmul.f32.gmra.mxu0 %v2350_v4 }
  0xbb   : > { %v2372_v50 = vpop.f32.mrf.mxu2  ;;  %v511_v21 = vpop.f32.mrf.mxu0 }
  0xbd   : > { %676 = vmatmul.f32.gmra.mxu2 %v2370_v13  ;;  %v2381_v18 = vpop.f32.mrf.mxu3 }
  0xbe   : > { %611 = vmatmul.f32.gmra.mxu1 %v2306_v57  ;;  %v2384_v19 = vpop.f32.mrf.mxu1 }
  0xc0   : > { %741 = vmatmul.f32.gmra.mxu3 %v2376_v14  ;;  %803 = vmatmul.f32.gmra.mxu0 %v2379_v15 }
  0xc3   : > { %v2394_v24 = vpop.f32.mrf.mxu2 }
  0xc5   : > { %679 = vmatmul.f32.gmra.mxu2 %v2392_v23 }
  0xc6   : > { %614 = vmatmul.f32.gmra.mxu1 %v2328_v62  ;;  %v2404_v29 = vpop.f32.mrf.mxu3 }
  0xc7   : > { %v2406_v30 = vpop.f32.mrf.mxu1 }
  0xc8   : > { %744 = vmatmul.f32.gmra.mxu3 %v2398_v25  ;;  %806 = vmatmul.f32.gmra.mxu0 %v2401_v26 }
  0xc9   : > { %v514_v33 = vpop.f32.mrf.mxu0 }
  0xcc   : > { %v2413_v38 = vpop.f32.mrf.mxu2 }
  0xcd   : > { %682 = vmatmul.f32.gmra.mxu2 %v2411_v34 }
  0xce   : > { %617 = vmatmul.f32.gmra.mxu1 %v2350_v4 }
  0xd0   : > { %747 = vmatmul.f32.gmra.mxu3 %v2417_v39  ;;  %809 = vmatmul.f32.gmra.mxu0 %v2420_v40  ;;  %v2425_v41 = vpop.f32.mrf.mxu3 }
  0xd1   : > { %v2427_v44 = vpop.f32.mrf.mxu1 }
  0xd3   : > { %v517_v45 = vpop.f32.mrf.mxu0 }
  0xd5   : > { %685 = vmatmul.f32.gmra.mxu2 %v2430_v16 }
  0xd6   : > { %620 = vmatmul.f32.gmra.mxu1 %v2379_v15  ;;  %v2440_v52 = vpop.f32.mrf.mxu2 }
  0xd8   : > { %750 = vmatmul.f32.gmra.mxu3 %v2434_v46  ;;  %812 = vmatmul.f32.gmra.mxu0 %v2437_v51 }
  0xda   : > { %v2444_v53 = vpop.f32.mrf.mxu3 }
  0xdb   : > { %v576_v54 = vpop.f32.mrf.mxu1 }
  0xdc   : > { %v577_v60 = vadd.f32 %v576_v54, %v511_v21 }
  0xdd   : > { %v520_v58 = vpop.f32.mrf.mxu0  ;;  %900 = vmatmul.f32.vlgmr.msra.gmra.mxu2 %v1846_v17 }
  0xde   : > { %835 = vmatmul.f32.vlgmr.msra.gmra.mxu1 %v2198_v22 }
  0xe0   : > { %815 = vmatmul.f32.gmra.mxu0 %v2448_v59  ;;  %965 = vmatmul.f32.vlgmr.msra.gmra.mxu3 %v2221_v28  ;;  %v641_v32 = vpop.f32.mrf.mxu2 }
  0xe1   : > { %v642_v63 = vadd.f32 %v641_v32, %v577_v60 }
  0xe3   : > { %v579_v0 = vpop.f32.mrf.mxu1  ;;  %v706_v1 = vpop.f32.mrf.mxu3 }
  0xe4   : > { %v2453_v2 = vadd.f32 %v706_v1, %v642_v63  ;;  %v580_v17 = vadd.f32 %v579_v0, %v514_v33 }
  0xe5   : > { %v2455_v8 = vpop.f32.mrf.mxu0  ;;  %903 = vmatmul.f32.gmra.mxu2 %v1889_v31 }
  0xe6   : > { %838 = vmatmul.f32.gmra.mxu1 %v2217_v27 }
  0xe8   : > { %968 = vmatmul.f32.gmra.mxu3 %v2242_v37  ;;  %1030 = vmatmul.f32.vlgmr.msra.gmra.mxu0 %v2280_v47  ;;  %v644_v22 = vpop.f32.mrf.mxu2 }
  0xe9   : > { %v645_v9 = vadd.f32 %v644_v22, %v580_v17 }
  0xeb   : > { %v582_v28 = vpop.f32.mrf.mxu1  ;;  %v709_v10 = vpop.f32.mrf.mxu3 }
  0xec   : > { %v2461_v11 = vadd.f32 %v709_v10, %v645_v9  ;;  %v583_v31 = vadd.f32 %v582_v28, %v517_v45 }
  0xed   : > { %v2463_v21 = vpop.f32.mrf.mxu0  ;;  %906 = vmatmul.f32.gmra.mxu2 %v1946_v49 }
  0xee   : > { %841 = vmatmul.f32.gmra.mxu1 %v2238_v35 }
  0xf0   : > { %971 = vmatmul.f32.gmra.mxu3 %v2263_v43  ;;  %1033 = vmatmul.f32.gmra.mxu0 %v2302_v55  ;;  %v647_v27 = vpop.f32.mrf.mxu2 }
  0xf1   : > { %v648_v37 = vadd.f32 %v647_v27, %v583_v31 }
  0xf3   : > { %v585_v6 = vpop.f32.mrf.mxu1  ;;  %v712_v33 = vpop.f32.mrf.mxu3 }
  0xf4   : > { %v2469_v54 = vadd.f32 %v712_v33, %v648_v37  ;;  %v586_v49 = vadd.f32 %v585_v6, %v520_v58 }
  0xf5   : > { %v2471_v60 = vpop.f32.mrf.mxu0  ;;  %909 = vmatmul.f32.gmra.mxu2 %v2007_v5 }
  0xf6   : > { %844 = vmatmul.f32.gmra.mxu1 %v2259_v42 }
  0xf8   : > { %974 = vmatmul.f32.gmra.mxu3 %v2284_v48  ;;  %1036 = vmatmul.f32.gmra.mxu0 %v2324_v61  ;;  %v650_v35 = vpop.f32.mrf.mxu2 }
  0xf9   : > { %v651_v43 = vadd.f32 %v650_v35, %v586_v49 }
  0xfb   : > { %v588_v45 = vpop.f32.mrf.mxu1  ;;  %v715_v32 = vpop.f32.mrf.mxu3 }
  0xfc   : > { %v2477_v63 = vadd.f32 %v715_v32, %v651_v43  ;;  %v589_v5 = vadd.f32 %v588_v45, %v2352_v7  ;;  %v1419_v32 = vld [vmem:[%s1837_s20 + $0xc4] sm:$0xff] }
  0xfd   : > { %v2479_v0 = vpop.f32.mrf.mxu0  ;;  %912 = vmatmul.f32.gmra.mxu2 %v1855_v20 }
  0xfe   : > { %847 = vmatmul.f32.gmra.mxu1 %v2280_v47 }
 0x100   : > { %977 = vmatmul.f32.gmra.mxu3 %v2306_v57  ;;  %1039 = vmatmul.f32.gmra.mxu0 %v2346_v3  ;;  %v653_v42 = vpop.f32.mrf.mxu2 }
 0x101   : > { %v654_v48 = vadd.f32 %v653_v42, %v589_v5 }
 0x103   : > { %v591_v58 = vpop.f32.mrf.mxu1  ;;  %v718_v1 = vpop.f32.mrf.mxu3 }
 0x104   : > { %v2486_v17 = vadd.f32 %v718_v1, %v654_v48  ;;  %v592_v20 = vadd.f32 %v591_v58, %v2384_v19 }
 0x105   : > { %v2488_v22 = vpop.f32.mrf.mxu0  ;;  %915 = vmatmul.f32.gmra.mxu2 %v1905_v36 }
 0x106   : > { %850 = vmatmul.f32.gmra.mxu1 %v2302_v55 }
 0x108   : > { %980 = vmatmul.f32.gmra.mxu3 %v2328_v62  ;;  %1042 = vmatmul.f32.gmra.mxu0 %v2370_v13  ;;  %v656_v47 = vpop.f32.mrf.mxu2 }
 0x109   : > { %v657_v57 = vadd.f32 %v656_v47, %v592_v20 }
 0x10b   : > { %v594_v7 = vpop.f32.mrf.mxu1  ;;  %v721_v9 = vpop.f32.mrf.mxu3 }
 0x10c   : > { %v2495_v28 = vadd.f32 %v721_v9, %v657_v57  ;;  %v595_v36 = vadd.f32 %v594_v7, %v2406_v30 }
 0x10d   : > { %v2497_v10 = vpop.f32.mrf.mxu0  ;;  %918 = vmatmul.f32.gmra.mxu2 %v1967_v56 }
 0x10e   : > { %853 = vmatmul.f32.gmra.mxu1 %v2324_v61 }
 0x110   : > { %983 = vmatmul.f32.gmra.mxu3 %v2350_v4  ;;  %1045 = vmatmul.f32.gmra.mxu0 %v2392_v23  ;;  %v659_v55 = vpop.f32.mrf.mxu2 }
 0x111   : > { %v660_v62 = vadd.f32 %v659_v55, %v595_v36  ;;  %v1391_v36 = vld [vmem:[%s1837_s20 + $0xf0] sm:$0xff] }
 0x113   : > { %v597_v19 = vpop.f32.mrf.mxu1  ;;  %v724_v31 = vpop.f32.mrf.mxu3 }
 0x114   : > { %v2504_v27 = vadd.f32 %v724_v31, %v660_v62  ;;  %v598_v56 = vadd.f32 %v597_v19, %v2427_v44 }
 0x115   : > { %v2506_v37 = vpop.f32.mrf.mxu0  ;;  %921 = vmatmul.f32.gmra.mxu2 %v2028_v12 }
 0x116   : > { %856 = vmatmul.f32.gmra.mxu1 %v2346_v3 }
 0x118   : > { %986 = vmatmul.f32.gmra.mxu3 %v2379_v15  ;;  %1048 = vmatmul.f32.gmra.mxu0 %v2411_v34  ;;  %v662_v61 = vpop.f32.mrf.mxu2 }
 0x119   : > { %v663_v4 = vadd.f32 %v662_v61, %v598_v56  ;;  %v1422_v56 = vld [vmem:[%s1837_s20 + $0xe4] sm:$0xff] }
 0x11b   : > { %v600_v30 = vpop.f32.mrf.mxu1  ;;  %v727_v6 = vpop.f32.mrf.mxu3 }
 0x11c   : > { %v2513_v33 = vadd.f32 %v727_v6, %v663_v4  ;;  %v601_v12 = vadd.f32 %v600_v30, %v2372_v50  ;;  %v1392_v4 = vld [vmem:[%s1837_s20 + $0xf8] sm:$0xff] }
 0x11d   : > { %v2515_v49 = vpop.f32.mrf.mxu0  ;;  %924 = vmatmul.f32.gmra.mxu2 %v2376_v14 }
 0x11e   : > { %859 = vmatmul.f32.gmra.mxu1 %v2370_v13 }
 0x120   : > { %989 = vmatmul.f32.gmra.mxu3 %v2401_v26  ;;  %1051 = vmatmul.f32.gmra.mxu0 %v2430_v16  ;;  %v665_v3 = vpop.f32.mrf.mxu2 }
 0x121   : > { %v666_v15 = vadd.f32 %v665_v3, %v601_v12 }
 0x123   : > { %v603_v44 = vpop.f32.mrf.mxu1  ;;  %v730_v35 = vpop.f32.mrf.mxu3 }
 0x124   : > { %v731_v43 = vadd.f32 %v730_v35, %v666_v15  ;;  %v604_v13 = vadd.f32 %v603_v44, %v2394_v24  ;;  %v1408_v15 = vld [vmem:[%s1837_s20 + $0xfa] sm:$0xff] }
 0x125   : > { %v795_v45 = vpop.f32.mrf.mxu0  ;;  %927 = vmatmul.f32.gmra.mxu2 %v2398_v25  ;;  %v1420_v25 = vld [vmem:[%s1837_s20 + $0xcc] sm:$0xff]  ;;  %v1423_v44 = vld [vmem:[%s1837_s20 + $0xf4] sm:$0xff] }
 0x126   : > { %v2524_v5 = vadd.f32 %v795_v45, %v731_v43  ;;  %862 = vmatmul.f32.gmra.mxu1 %v2392_v23 }
 0x128   : > { %992 = vmatmul.f32.gmra.mxu3 %v2420_v40  ;;  %1054 = vmatmul.f32.gmra.mxu0 %v1419_v32  ;;  %v668_v50 = vpop.f32.mrf.mxu2 }
 0x129   : > { %v669_v14 = vadd.f32 %v668_v50, %v604_v13 }
 0x12b   : > { %v606_v26 = vpop.f32.mrf.mxu1  ;;  %v733_v42 = vpop.f32.mrf.mxu3 }
 0x12c   : > { %v734_v48 = vadd.f32 %v733_v42, %v669_v14  ;;  %v607_v23 = vadd.f32 %v606_v26, %v2413_v38  ;;  %v1409_v42 = vld [vmem:[%s1837_s20 + $0x10a] sm:$0xff] }
 0x12d   : > { %v798_v58 = vpop.f32.mrf.mxu0  ;;  %930 = vmatmul.f32.gmra.mxu2 %v2417_v39  ;;  %v1421_v39 = vld [vmem:[%s1837_s20 + $0xdc] sm:$0xff] }
 0x12e   : > { %v2531_v1 = vadd.f32 %v798_v58, %v734_v48  ;;  %865 = vmatmul.f32.gmra.mxu1 %v2411_v34  ;;  %v1424_v48 = vld [vmem:[%s1837_s20 + $0xfc] sm:$0xff] }
 0x130   : > { %995 = vmatmul.f32.gmra.mxu3 %v2437_v51  ;;  %1057 = vmatmul.f32.gmra.mxu0 %v1420_v25  ;;  %v671_v24 = vpop.f32.mrf.mxu2 }
 0x131   : > { %v672_v40 = vadd.f32 %v671_v24, %v607_v23  ;;  %v1394_v24 = vld [vmem:[%s1837_s20 + $0x110] sm:$0xff] }
 0x133   : > { %v609_v20 = vpop.f32.mrf.mxu1  ;;  %v736_v47 = vpop.f32.mrf.mxu3 }
 0x134   : > { %v737_v57 = vadd.f32 %v736_v47, %v672_v40  ;;  %v610_v34 = vadd.f32 %v609_v20, %v2440_v52 }
 0x135   : > { %v801_v7 = vpop.f32.mrf.mxu0  ;;  %933 = vmatmul.f32.gmra.mxu2 %v2434_v46  ;;  %v1407_v46 = vld [vmem:[%s1837_s20 + $0xf2] sm:$0xff] }
 0x136   : > { %v2538_v9 = vadd.f32 %v801_v7, %v737_v57  ;;  %868 = vmatmul.f32.gmra.mxu1 %v2430_v16  ;;  %v1410_v7 = vld [vmem:[%s1837_s20 + $0x112] sm:$0xff] }
 0x138   : > { %998 = vmatmul.f32.gmra.mxu3 %v2448_v59  ;;  %1060 = vmatmul.f32.gmra.mxu0 %v1421_v39  ;;  %v674_v38 = vpop.f32.mrf.mxu2 }
 0x139   : > { %v675_v51 = vadd.f32 %v674_v38, %v610_v34  ;;  %v1425_v34 = vld [vmem:[%s1837_s20 + $0x10c] sm:$0xff] }
 0x13b   : > { %v612_v55 = vpop.f32.mrf.mxu1  ;;  %v739_v62 = vpop.f32.mrf.mxu3 }
 0x13c   : > { %v740_v19 = vadd.f32 %v739_v62, %v675_v51  ;;  %v613_v16 = vadd.f32 %v612_v55, %v2381_v18 }
 0x13d   : > { %v804_v31 = vpop.f32.mrf.mxu0  ;;  %936 = vmatmul.f32.gmra.mxu2 %v1391_v36 }
 0x13e   : > { %v2546_v61 = vadd.f32 %v804_v31, %v740_v19  ;;  %871 = vmatmul.f32.gmra.mxu1 %v1419_v32  ;;  %v1393_v32 = vld [vmem:[%s1837_s20 + $0x108] sm:$0xff]  ;;  %v772_v19 = vadd.f32 %v2455_v8, %v2453_v2 }
 0x140   : > { %1001 = vmatmul.f32.gmra.mxu3 %v1407_v46  ;;  %1063 = vmatmul.f32.gmra.mxu0 %v1422_v56  ;;  %v677_v52 = vpop.f32.mrf.mxu2  ;;  %v1426_v46 = vld [vmem:[%s1837_s20 + $0x114] sm:$0xff]  ;;  %s2578_s20 = scalar_lea.vmem [#allocation2], %s1322_s11  ;;  %s1579_s11 = sshra.s32 %s1180_s7, 4  ;;  %s1580_s11 = int_to_ptr.hbm [resolvable:$true] %s1579_s11 }
 0x141   : > { %v678_v59 = vadd.f32 %v677_v52, %v613_v16  ;;  %s1177_s6 = sshll.u32 %s2578_s20, 4  ;;  %s1581_s21 = scalar_lea.hbm %s1580_s11, 128  ;;  %s1178_s6 = int_to_ptr.vmem [resolvable:$true] %s1177_s6 }
 0x142   : > { %p1582_p13 = scmp.ne.s32.totalorder %s1580_s11, %s1581_s21  ;;  %p1586_p2 = scmp.lt.s32.totalorder %s1580_s11, %s2680_s2 }
 0x143   : > { %v615_v30 = vpop.f32.mrf.mxu1  ;;  %v742_v6 = vpop.f32.mrf.mxu3  ;;  %p1587_p4 = scmp.lt.s32.totalorder %s1585_s28, %s1581_s21 }
 0x144   : > { %v743_v12 = vadd.f32 %v742_v6, %v678_v59  ;;  %v616_v18 = vadd.f32 %v615_v30, %v2404_v29  ;;  %v775_v6 = vadd.f32 %v2463_v21, %v2461_v11  ;;  %p1583_p0 = pnand %p1582_p13, %p1766_p3 }
 0x145   : > { %v807_v3 = vpop.f32.mrf.mxu0  ;;  %939 = vmatmul.f32.gmra.mxu2 %v1392_v4  ;;  %p1588_p5 = por %p1587_p4, %p1586_p2 }
 0x146   : > { %v2552_v35 = vadd.f32 %v807_v3, %v743_v12  ;;  %874 = vmatmul.f32.gmra.mxu1 %v1420_v25  ;;  %p1584_p1 = pneg %p1583_p0 }
 0x148   : > { %1004 = vmatmul.f32.gmra.mxu3 %v1408_v15  ;;  %1066 = vmatmul.f32.gmra.mxu0 %v1423_v44  ;;  %v680_v43 = vpop.f32.mrf.mxu2  ;;  %p1589_p6 = pnand %p1588_p5, %p1584_p1 }
 0x149   : > { %v681_v45 = vadd.f32 %v680_v43, %v616_v18 }
 0x14b   : > { %v618_v13 = vpop.f32.mrf.mxu1  ;;  %v745_v50 = vpop.f32.mrf.mxu3 }
 0x14c   : > { %v746_v14 = vadd.f32 %v745_v50, %v681_v45  ;;  %v619_v29 = vadd.f32 %v618_v13, %v2425_v41  ;;  %v778_v45 = vadd.f32 %v2471_v60, %v2469_v54 }
 0x14d   : > { %v810_v26 = vpop.f32.mrf.mxu0  ;;  %942 = vmatmul.f32.gmra.mxu2 %v1393_v32 }
 0x14e   : > { %v2558_v58 = vadd.f32 %v810_v26, %v746_v14  ;;  %877 = vmatmul.f32.gmra.mxu1 %v1421_v39 }
 0x150   : > { %1007 = vmatmul.f32.gmra.mxu3 %v1409_v42  ;;  %1069 = vmatmul.f32.gmra.mxu0 %v1424_v48  ;;  %v683_v25 = vpop.f32.mrf.mxu2 }
 0x151   : > { %v684_v23 = vadd.f32 %v683_v25, %v619_v29 }
 0x153   : > { %v621_v40 = vpop.f32.mrf.mxu1  ;;  %v748_v20 = vpop.f32.mrf.mxu3 }
 0x154   : > { %v749_v47 = vadd.f32 %v748_v20, %v684_v23  ;;  %v622_v39 = vadd.f32 %v621_v40, %v2444_v53 }
 0x155   : > { %v813_v57 = vpop.f32.mrf.mxu0  ;;  %945 = vmatmul.f32.gmra.mxu2 %v1394_v24  ;;  %v781_v24 = vadd.f32 %v2479_v0, %v2477_v63 }
 0x156   : > { %v2564_v38 = vadd.f32 %v813_v57, %v749_v47  ;;  %880 = vmatmul.f32.gmra.mxu1 %v1422_v56 }
 0x158   : > { %1010 = vmatmul.f32.gmra.mxu3 %v1410_v7  ;;  %1072 = vmatmul.f32.gmra.mxu0 %v1425_v34  ;;  %v686_v41 = vpop.f32.mrf.mxu2 }
 0x159   : > { %v687_v51 = vadd.f32 %v686_v41, %v622_v39 }
 0x15b   : > { %v751_v36 = vpop.f32.mrf.mxu3  ;;  %v836_v55 = vpop.f32.mrf.mxu1 }
 0x15c   : > { %v752_v62 = vadd.f32 %v751_v36, %v687_v51  ;;  %v837_v52 = vadd.f32 %v836_v55, %v772_v19  ;;  %v784_v36 = vadd.f32 %v2488_v22, %v2486_v17 }
 0x15d   : > { %v816_v31 = vpop.f32.mrf.mxu0 }
 0x15e   : > { %v2570_v16 = vadd.f32 %v816_v31, %v752_v62 }
 0x160   : > { %1075 = vmatmul.f32.gmra.mxu0 %v1426_v46  ;;  %v901_v53 = vpop.f32.mrf.mxu2 }
 0x161   : > { %v902_v56 = vadd.f32 %v901_v53, %v837_v52 }
 0x163   : > { %v839_v59 = vpop.f32.mrf.mxu1  ;;  %v966_v4 = vpop.f32.mrf.mxu3 }
 0x164   : > { %v967_v30 = vadd.f32 %v966_v4, %v902_v56  ;;  %v840_v8 = vadd.f32 %v839_v59, %v775_v6  ;;  %v787_v4 = vadd.f32 %v2497_v10, %v2495_v28 }
 0x165   : > { %v1031_v12 = vpop.f32.mrf.mxu0 }
 0x166   : > { %v1032_v2 = vadd.f32 %v1031_v12, %v967_v30 }
 0x168   : > { %1079 = vst [vmem:[%s2578_s20] sm:$0xff] %v1032_v2  ;;  %v904_v3 = vpop.f32.mrf.mxu2  ;;  %v1116_v21 = vmul.f32 %v1032_v2, %v1032_v2 }
 0x169   : > { %v905_v15 = vadd.f32 %v904_v3, %v840_v8 }
 0x16b   : > { %v842_v44 = vpop.f32.mrf.mxu1  ;;  %v969_v18 = vpop.f32.mrf.mxu3 }
 0x16c   : > { %v970_v43 = vadd.f32 %v969_v18, %v905_v15  ;;  %v843_v11 = vadd.f32 %v842_v44, %v778_v45 }
 0x16d   : > { %v1034_v32 = vpop.f32.mrf.mxu0 }
 0x16e   : > { %v1035_v13 = vadd.f32 %v1034_v32, %v970_v43  ;;  %v790_v43 = vadd.f32 %v2506_v37, %v2504_v27 }
 0x170   : > { %1080 = vst [vmem:[%s2578_s20 + $0x8] sm:$0xff] %v1035_v13  ;;  %v1095_v50 = vadd.f32 %v1035_v13, %v1032_v2  ;;  %v1117_v14 = vmul.f32 %v1035_v13, %v1035_v13  ;;  %v907_v26 = vpop.f32.mrf.mxu2 }
 0x171   : > { %v908_v42 = vadd.f32 %v907_v26, %v843_v11 }
 0x172   : > { %v1132_v48 = vadd.f32 %v1117_v14, %v1116_v21 }
 0x173   : > { %v845_v29 = vpop.f32.mrf.mxu1  ;;  %v972_v25 = vpop.f32.mrf.mxu3 }
 0x174   : > { %v973_v23 = vadd.f32 %v972_v25, %v908_v42  ;;  %v846_v60 = vadd.f32 %v845_v29, %v781_v24 }
 0x175   : > { %v1037_v40 = vpop.f32.mrf.mxu0 }
 0x176   : > { %v1038_v54 = vadd.f32 %v1037_v40, %v973_v23 }
 0x178   : > { %1081 = vst [vmem:[%s2578_s20 + $0x10] sm:$0xff] %v1038_v54  ;;  %v1096_v20 = vadd.f32 %v1095_v50, %v1038_v54  ;;  %v1118_v47 = vmul.f32 %v1038_v54, %v1038_v54  ;;  %v910_v57 = vpop.f32.mrf.mxu2 }
 0x179   : > { %v911_v7 = vadd.f32 %v910_v57, %v846_v60 }
 0x17a   : > { %v1133_v34 = vadd.f32 %v1132_v48, %v1118_v47  ;;  %v793_v48 = vadd.f32 %v2515_v49, %v2513_v33 }
 0x17b   : > { %v848_v39 = vpop.f32.mrf.mxu1  ;;  %v975_v41 = vpop.f32.mrf.mxu3 }
 0x17c   : > { %v976_v51 = vadd.f32 %v975_v41, %v911_v7  ;;  %v849_v63 = vadd.f32 %v848_v39, %v784_v36 }
 0x17d   : > { %v1040_v55 = vpop.f32.mrf.mxu0 }
 0x17e   : > { %v1041_v62 = vadd.f32 %v1040_v55, %v976_v51 }
 0x180   : > { %1082 = vst [vmem:[%s2578_s20 + $0x18] sm:$0xff] %v1041_v62  ;;  %v1097_v0 = vadd.f32 %v1096_v20, %v1041_v62  ;;  %v1119_v19 = vmul.f32 %v1041_v62, %v1041_v62  ;;  %v913_v31 = vpop.f32.mrf.mxu2 }
 0x181   : > { %v914_v46 = vadd.f32 %v913_v31, %v849_v63 }
 0x182   : > { %v1134_v52 = vadd.f32 %v1133_v34, %v1119_v19 }
 0x183   : > { %v851_v53 = vpop.f32.mrf.mxu1  ;;  %v978_v56 = vpop.f32.mrf.mxu3 }
 0x184   : > { %v979_v59 = vadd.f32 %v978_v56, %v914_v46  ;;  %v852_v17 = vadd.f32 %v851_v53, %v787_v4 }
 0x185   : > { %v1043_v30 = vpop.f32.mrf.mxu0 }
 0x186   : > { %v1044_v6 = vadd.f32 %v1043_v30, %v979_v59 }
 0x188   : > { %1083 = vst [vmem:[%s2578_s20 + $0x20] sm:$0xff] %v1044_v6  ;;  %v1098_v22 = vadd.f32 %v1097_v0, %v1044_v6  ;;  %v1120_v12 = vmul.f32 %v1044_v6, %v1044_v6  ;;  %v916_v2 = vpop.f32.mrf.mxu2 }
 0x189   : > { %v917_v8 = vadd.f32 %v916_v2, %v852_v17 }
 0x18a   : > { %v1135_v3 = vadd.f32 %v1134_v52, %v1120_v12 }
 0x18b   : > { %v854_v15 = vpop.f32.mrf.mxu1  ;;  %v981_v44 = vpop.f32.mrf.mxu3 }
 0x18c   : > { %v982_v18 = vadd.f32 %v981_v44, %v917_v8  ;;  %v855_v28 = vadd.f32 %v854_v15, %v790_v43 }
 0x18d   : > { %v1046_v45 = vpop.f32.mrf.mxu0 }
 0x18e   : > { %v1047_v32 = vadd.f32 %v1046_v45, %v982_v18 }
 0x190   : > { %1084 = vst [vmem:[%s2578_s20 + $0x28] sm:$0xff] %v1047_v32  ;;  %v1099_v10 = vadd.f32 %v1098_v22, %v1047_v32  ;;  %v1121_v13 = vmul.f32 %v1047_v32, %v1047_v32  ;;  %v919_v11 = vpop.f32.mrf.mxu2 }
 0x191   : > { %v920_v21 = vadd.f32 %v919_v11, %v855_v28 }
 0x192   : > { %v1136_v50 = vadd.f32 %v1135_v3, %v1121_v13 }
 0x193   : > { %v857_v14 = vpop.f32.mrf.mxu1  ;;  %v984_v26 = vpop.f32.mrf.mxu3 }
 0x194   : > { %v985_v42 = vadd.f32 %v984_v26, %v920_v21  ;;  %v858_v27 = vadd.f32 %v857_v14, %v793_v48 }
 0x195   : > { %v1049_v29 = vpop.f32.mrf.mxu0 }
 0x196   : > { %v1050_v25 = vadd.f32 %v1049_v29, %v985_v42 }
 0x198   : > { %1085 = vst [vmem:[%s2578_s20 + $0x30] sm:$0xff] %v1050_v25  ;;  %v1100_v37 = vadd.f32 %v1099_v10, %v1050_v25  ;;  %v1122_v23 = vmul.f32 %v1050_v25, %v1050_v25  ;;  %v922_v24 = vpop.f32.mrf.mxu2 }
 0x199   : > { %v923_v40 = vadd.f32 %v922_v24, %v858_v27 }
 0x19a   : > { %v1137_v54 = vadd.f32 %v1136_v50, %v1122_v23 }
 0x19b   : > { %v860_v60 = vpop.f32.mrf.mxu1  ;;  %v987_v20 = vpop.f32.mrf.mxu3 }
 0x19c   : > { %v988_v47 = vadd.f32 %v987_v20, %v923_v40  ;;  %v861_v34 = vadd.f32 %v860_v60, %v2524_v5 }
 0x19d   : > { %v1052_v57 = vpop.f32.mrf.mxu0 }
 0x19e   : > { %v1053_v7 = vadd.f32 %v1052_v57, %v988_v47 }
 0x1a0   : > { %1086 = vst [vmem:[%s2578_s20 + $0x38] sm:$0xff] %v1053_v7  ;;  %v1101_v33 = vadd.f32 %v1100_v37, %v1053_v7  ;;  %v1123_v49 = vmul.f32 %v1053_v7, %v1053_v7  ;;  %v925_v39 = vpop.f32.mrf.mxu2 }
 0x1a1   : > { %v926_v41 = vadd.f32 %v925_v39, %v861_v34 }
 0x1a2   : > { %v1138_v51 = vadd.f32 %v1137_v54, %v1123_v49 }
 0x1a3   : > { %v863_v36 = vpop.f32.mrf.mxu1  ;;  %v990_v55 = vpop.f32.mrf.mxu3 }
 0x1a4   : > { %v991_v62 = vadd.f32 %v990_v55, %v926_v41  ;;  %v864_v19 = vadd.f32 %v863_v36, %v2531_v1 }
 0x1a5   : > { %v1055_v63 = vpop.f32.mrf.mxu0 }
 0x1a6   : > { %v1056_v0 = vadd.f32 %v1055_v63, %v991_v62 }
 0x1a8   : > { %1087 = vst [vmem:[%s2578_s20 + $0x40] sm:$0xff] %v1056_v0  ;;  %v1102_v31 = vadd.f32 %v1101_v33, %v1056_v0  ;;  %v1124_v46 = vmul.f32 %v1056_v0, %v1056_v0  ;;  %v928_v52 = vpop.f32.mrf.mxu2 }
 0x1a9   : > { %v929_v53 = vadd.f32 %v928_v52, %v864_v19 }
 0x1aa   : > { %v1139_v5 = vadd.f32 %v1138_v51, %v1124_v46 }
 0x1ab   : > { %v866_v56 = vpop.f32.mrf.mxu1  ;;  %v993_v59 = vpop.f32.mrf.mxu3 }
 0x1ac   : > { %v994_v4 = vadd.f32 %v993_v59, %v929_v53  ;;  %v867_v17 = vadd.f32 %v866_v56, %v2538_v9 }
 0x1ad   : > { %v1058_v30 = vpop.f32.mrf.mxu0 }
 0x1ae   : > { %v1059_v6 = vadd.f32 %v1058_v30, %v994_v4 }
 0x1b0   : > { %1088 = vst [vmem:[%s2578_s20 + $0x48] sm:$0xff] %v1059_v6  ;;  %v1103_v22 = vadd.f32 %v1102_v31, %v1059_v6  ;;  %v1125_v12 = vmul.f32 %v1059_v6, %v1059_v6  ;;  %v931_v2 = vpop.f32.mrf.mxu2 }
 0x1b1   : > { %v932_v8 = vadd.f32 %v931_v2, %v867_v17 }
 0x1b2   : > { %v1140_v1 = vadd.f32 %v1139_v5, %v1125_v12 }
 0x1b3   : > { %v869_v3 = vpop.f32.mrf.mxu1  ;;  %v996_v15 = vpop.f32.mrf.mxu3 }
 0x1b4   : > { %v997_v44 = vadd.f32 %v996_v15, %v932_v8  ;;  %v870_v45 = vadd.f32 %v869_v3, %v2546_v61 }
 0x1b5   : > { %v1061_v18 = vpop.f32.mrf.mxu0 }
 0x1b6   : > { %v1062_v43 = vadd.f32 %v1061_v18, %v997_v44 }
 0x1b8   : > { %1089 = vst [vmem:[%s2578_s20 + $0x50] sm:$0xff] %v1062_v43  ;;  %v1104_v32 = vadd.f32 %v1103_v22, %v1062_v43  ;;  %v1126_v28 = vmul.f32 %v1062_v43, %v1062_v43  ;;  %v934_v10 = vpop.f32.mrf.mxu2 }
 0x1b9   : > { %v935_v13 = vadd.f32 %v934_v10, %v870_v45 }
 0x1ba   : > { %v1141_v9 = vadd.f32 %v1140_v1, %v1126_v28 }
 0x1bb   : > { %v872_v11 = vpop.f32.mrf.mxu1  ;;  %v999_v21 = vpop.f32.mrf.mxu3 }
 0x1bc   : > { %v1000_v50 = vadd.f32 %v999_v21, %v935_v13  ;;  %v873_v42 = vadd.f32 %v872_v11, %v2552_v35 }
 0x1bd   : > { %v1064_v14 = vpop.f32.mrf.mxu0 }
 0x1be   : > { %v1065_v26 = vadd.f32 %v1064_v14, %v1000_v50 }
 0x1c0   : > { %1090 = vst [vmem:[%s2578_s20 + $0x58] sm:$0xff] %v1065_v26  ;;  %v1105_v48 = vadd.f32 %v1104_v32, %v1065_v26  ;;  %v1127_v29 = vmul.f32 %v1065_v26, %v1065_v26  ;;  %v937_v25 = vpop.f32.mrf.mxu2 }
 0x1c1   : > { %v938_v27 = vadd.f32 %v937_v25, %v873_v42 }
 0x1c2   : > { %v1142_v61 = vadd.f32 %v1141_v9, %v1127_v29 }
 0x1c3   : > { %v875_v37 = vpop.f32.mrf.mxu1  ;;  %v1002_v23 = vpop.f32.mrf.mxu3 }
 0x1c4   : > { %v1003_v24 = vadd.f32 %v1002_v23, %v938_v27  ;;  %v876_v60 = vadd.f32 %v875_v37, %v2558_v58 }
 0x1c5   : > { %v1067_v40 = vpop.f32.mrf.mxu0 }
 0x1c6   : > { %v1068_v54 = vadd.f32 %v1067_v40, %v1003_v24 }
 0x1c8   : > { %1091 = vst [vmem:[%s2578_s20 + $0x60] sm:$0xff] %v1068_v54  ;;  %v1106_v20 = vadd.f32 %v1105_v48, %v1068_v54  ;;  %v1128_v47 = vmul.f32 %v1068_v54, %v1068_v54  ;;  %v940_v35 = vpop.f32.mrf.mxu2 }
 0x1c9   : > { %v941_v57 = vadd.f32 %v940_v35, %v876_v60 }
 0x1ca   : > { %v1143_v7 = vadd.f32 %v1142_v61, %v1128_v47 }
 0x1cb   : > { %v878_v34 = vpop.f32.mrf.mxu1  ;;  %v1005_v33 = vpop.f32.mrf.mxu3 }
 0x1cc   : > { %v1006_v49 = vadd.f32 %v1005_v33, %v941_v57  ;;  %v879_v51 = vadd.f32 %v878_v34, %v2564_v38 }
 0x1cd   : > { %v1070_v39 = vpop.f32.mrf.mxu0 }
 0x1ce   : > { %v1071_v41 = vadd.f32 %v1070_v39, %v1006_v49 }
 0x1d0   : > { %1092 = vst [vmem:[%s2578_s20 + $0x68] sm:$0xff] %v1071_v41  ;;  %v1107_v36 = vadd.f32 %v1106_v20, %v1071_v41  ;;  %v1129_v55 = vmul.f32 %v1071_v41, %v1071_v41  ;;  %v943_v58 = vpop.f32.mrf.mxu2 }
 0x1d1   : > { %v944_v62 = vadd.f32 %v943_v58, %v879_v51 }
 0x1d2   : > { %v1144_v63 = vadd.f32 %v1143_v7, %v1129_v55 }
 0x1d3   : > { %v1008_v0 = vpop.f32.mrf.mxu3  ;;  %v881_v19 = vpop.f32.mrf.mxu1 }
 0x1d4   : > { %v1009_v31 = vadd.f32 %v1008_v0, %v944_v62  ;;  %v882_v53 = vadd.f32 %v881_v19, %v2570_v16 }
 0x1d5   : > { %v1073_v46 = vpop.f32.mrf.mxu0 }
 0x1d6   : > { %v1074_v52 = vadd.f32 %v1073_v46, %v1009_v31 }
 0x1d8   : > { %1093 = vst [vmem:[%s2578_s20 + $0x70] sm:$0xff] %v1074_v52  ;;  %v1108_v38 = vadd.f32 %v1107_v36, %v1074_v52  ;;  %v1130_v5 = vmul.f32 %v1074_v52, %v1074_v52  ;;  %v946_v56 = vpop.f32.mrf.mxu2 }
 0x1d9   : > { %v947_v59 = vadd.f32 %v946_v56, %v882_v53 }
 0x1da   : > { %v1145_v4 = vadd.f32 %v1144_v63, %v1130_v5 }
 0x1db   : > { %v1011_v30 = vpop.f32.mrf.mxu3 }
 0x1dc   : > { %v1012_v6 = vadd.f32 %v1011_v30, %v947_v59 }
 0x1dd   : > { %v1076_v17 = vpop.f32.mrf.mxu0 }
 0x1de   : > { %v1077_v16 = vadd.f32 %v1076_v17, %v1012_v6 }
 0x1e0   : > { %1094 = vst [vmem:[%s2578_s20 + $0x78] sm:$0xff] %v1077_v16  ;;  %v1109_v22 = vadd.f32 %v1108_v38, %v1077_v16  ;;  %v1131_v12 = vmul.f32 %v1077_v16, %v1077_v16 }
 0x1e1   : > { %1592 = shalt.err (!%p1589_p6)
}
 0x1e2   : > { %s1693_s16 = smov 128   ;;  %s1694_s20 = smov 8   ;;  %v1110_v2 = vrot.slane %v1109_v22, 4  ;;  %v1146_v8 = vadd.f32 %v1145_v4, %v1131_v12  ;;  %vm1153_vm0 = vcmask 1040384  }
 0x1e3   : > { %1487 = dma.vmem_to_hbm [thread:$0]  (%p1766_p3), %s1178_s6, 2048, %s1180_s7, %s1157_s9, %s1693_s16, %s1693_s16, %s1694_s20  }
 0x1e4   : > { %s1192_s5 = sadd.s32 %s1675_s15, %s1433_s8  ;;  %v1111_v1 = vadd.f32 %v1110_v2, %v1109_v22  ;;  %v1147_v3 = vrot.slane %v1146_v8, 4  ;;  %s1323_s24 = sshll.u32 %s2573_s10, 1 }
 0x1e5   : > { %s1434_s11 = sshll.u32 %s1192_s5, 1  ;;  %s190_s6 = scalar_lea.vmem [#allocation4], %s1323_s24 }
 0x1e6   : > { %v1112_v15 = vrot.slane %v1111_v1, 2  ;;  %v1148_v44 = vadd.f32 %v1147_v3, %v1146_v8  ;;  %s1194_s28 = scalar_lea.hbm %s2681_s3, %s1434_s11  ;;  %s1196_s7 = sshll.u32 %s190_s6, 4  ;;  %s1197_s7 = int_to_ptr.vmem [resolvable:$true] %s1196_s7 }
 0x1e7   : > { %s1198_s15 = sshll.u32 %s1194_s28, 4  ;;  %s1162_s8 = scalar_lea.sflag [#allocation5], %s2573_s10  ;;  %s1199_s15 = int_to_ptr.hbm [resolvable:$true] %s1198_s15 }
 0x1e8   : > { %v1113_v18 = vadd.f32 %v1112_v15, %v1111_v1  ;;  %v1149_v43 = vrot.slane %v1148_v44, 2  ;;  %s1607_s9 = sshra.s32 %s1199_s15, 4  ;;  %s1613_s20 = scalar_lea.hbm %s2681_s3, 8  ;;  %s1608_s9 = int_to_ptr.hbm [resolvable:$true] %s1607_s9 }
 0x1e9   : > { %s1609_s29 = scalar_lea.hbm %s1608_s9, 2  ;;  %p1614_p11 = scmp.lt.s32.totalorder %s1608_s9, %s2681_s3 }
 0x1ea   : > { %v1114_v45 = vrot.slane %v1113_v18, 1  ;;  %v1150_v32 = vadd.f32 %v1149_v43, %v1148_v44  ;;  %p1610_p7 = scmp.ne.s32.totalorder %s1608_s9, %s1609_s29  ;;  %p1615_p12 = scmp.lt.s32.totalorder %s1613_s20, %s1609_s29 }
 0x1ec   : > { %v1151_v28 = vrot.slane %v1150_v32, 1  ;;  %v1115_v10 = vadd.f32 %v1114_v45, %v1113_v18  ;;  %p1611_p9 = pnand %p1610_p7, %p1766_p3  ;;  %p1616_p13 = por %p1615_p12, %p1614_p11 }
 0x1ee   : > { %v1152_v13 = vadd.f32 %v1151_v28, %v1150_v32  ;;  %p1612_p10 = pneg %p1611_p9 }
 0x1f0   : > { %v1154_v9 = vsel %vm1153_vm0, %v1115_v10, %v1152_v13  ;;  %p1617_p0 = pnand %p1616_p13, %p1612_p10 }
 0x1f1   : > { %1155 = vst [vmem:[%s190_s6] sm:$0x3] %v1154_v9 }
 0x1f2   : > { %1620 = shalt.err (!%p1617_p0)
}
 0x1f3   : > { %1488 = dma.vmem_to_hbm [thread:$0]  (%p1766_p3), %s1197_s7, 32, %s1199_s15, %s1162_s8  }
 0x1f4 PF: > { %p1498_p1 = scmp.ge.s32.totalorder %s1691_s19, 2  ;;  %s1210_s10 = sand.u32 1, %s1663_s12  }
 0x1f5   : > { %s1211_s11 = scalar_lea.sflag [#allocation3], %s1210_s10 }
 0x1f6   : > { %p1492_p2 = pnand %p1498_p1, %p1775_p8 }
 0x1f8   : > { %p1493_p4 = pneg %p1492_p2 }
 0x1fa   : > { %1654 = dma.done.wait (%p1493_p4), %s1211_s11, 2048  }
 0x1fb   : > { %1656 = vsyncadd (%p1493_p4), %s1211_s11, 4294965248  ;;  %s1221_s21 = scalar_lea.sflag [#allocation5], %s1210_s10 }
 0x1fc   : > { %1658 = dma.done.wait (%p1493_p4), %s1221_s21, 32  }
 0x1fd   : > { %1660 = vsyncadd (%p1493_p4), %s1221_s21, 4294967264  ;;  %s20_s19 = sadd.s32 1, %s1691_s19   ;;  %s2684_s12 = smov %s1667_s13 }
 0x1fe   : > { %p17_p5 = scmp.ge.s32.totalorder %s20_s19, 6   ;;  %s2685_s13 = smov %s1671_s14 }
 0x1ff   : > { %s2686_s14 = smov %s1784_s30  ;;  %s2687_s15 = smov %s1683_s17 }
 0x200   : > { %s2688_s16 = smov %s1687_s18  ;;  %s2689_s17 = smov %s2692_s22 }
 0x201   : > { %s2690_s18 = smov %s2696_s23  ;;  %19 = sbr.rel (!%p17_p5) target bundleno = 7 (0x7), region = 83 }
 0x206   :  { %1227 = vsyncpa [#allocation3], 1 }
 0x207   :  { %1229 = vsyncpa [#allocation3 + $0x1], 1 }
 0x208   :  { %1230 = vsyncpa [#allocation5], 1 }
 0x209   :  { %1232 = vsyncpa [#allocation5 + $0x1], 1 }

</bundles_post_ra>
